<compile_context>
chip_gen: v6e
topology: v6e:2x2x1
jax: 0.10.0
libtpu: 0.0.40
codegen_flags: <defaults>
</compile_context>

<pallas_src>
import functools
import math

import jax
import jax.numpy as jnp
from jax import lax
from jax.experimental import pallas as pl
from jax.experimental.pallas import tpu as pltpu


def _pool_kernel(b_ref, g1_ref, g2_ref, h_ref, w_ref, newh_ref, gg_ref, *, kk):
    # b: (1,) f32 in SMEM;  g1,g2: (B,N,N);  h: (B,N,D);  w: (1,D)   (all VMEM)
    # newh: (B, kk*D) lane-dense;  gg: (B, 2*kk*kk) = [gsec | out2] packed
    B, N, D = h_ref.shape

    h = h_ref[...].astype(jnp.float32)      # (B, N, D)
    g1 = g1_ref[...].astype(jnp.float32)    # (B, N, N)
    g2 = g2_ref[...].astype(jnp.float32)    # (B, N, N)
    w = w_ref[...].astype(jnp.float32)      # (1, D)

    # ---- projection on the VPU (broadcast-mul + lane reduce; no MXU matvec) ----
    # bias is a constant shift -> does not change the ranking; it is added to the
    # kk selected logits only, right before the sigmoid.
    logits = jnp.sum(h * w[None, :, :], axis=-1)            # (B, N) raw logits

    # ---- rank-based top-k (single compare cube, lax.top_k tie-breaking) --------
    # beats[b, n, m] == True  iff element m outranks element n
    #   (strictly greater, or equal with a lower index).
    li = logits[:, :, None]                                  # candidate n
    lm = logits[:, None, :]                                  # competitor m
    idx_n = lax.broadcasted_iota(jnp.int32, (B, N, N), 1)
    idx_m = lax.broadcasted_iota(jnp.int32, (B, N, N), 2)
    beats = (lm > li) | ((lm == li) & (idx_m < idx_n))       # (B, N, N)
    rank = jnp.sum(beats.astype(jnp.int32), axis=-1)         # (B, N); 0 == largest

    iota_k = lax.broadcasted_iota(jnp.int32, (B, kk, N), 1)
    sel = (rank[:, None, :] == iota_k).astype(jnp.float32)   # (B, kk, N) one-hot

    vals = jnp.sum(sel * logits[:, None, :], axis=-1)        # (B, kk) selected logits
    vals = jax.nn.sigmoid(vals + b_ref[0])                   # fold bias + sigmoid here

    # ---- gathers on the VPU (broadcast-mul + reduce over tiny intermediates) ---
    # new_h[b,j,d] = sum_n sel[b,j,n] * h[b,n,d]
    new_h = jnp.sum(sel[:, :, :, None] * h[:, None, :, :], axis=2)       # (B, kk, D)
    new_h = new_h * vals[:, :, None]

    # row gather then column gather for both adjacency tensors
    g1_rows = jnp.sum(sel[:, :, :, None] * g1[:, None, :, :], axis=2)    # (B, kk, N)
    gsec = jnp.sum(g1_rows[:, :, None, :] * sel[:, None, :, :], axis=-1)  # (B, kk, kk)

    g2_rows = jnp.sum(sel[:, :, :, None] * g2[:, None, :, :], axis=2)
    gsen = jnp.sum(g2_rows[:, :, None, :] * sel[:, None, :, :], axis=-1)  # (B, kk, kk)

    # second return of the reference: cat([gsen[0], gsen[1], gsec[2], gsec[3]])
    biota = lax.broadcasted_iota(jnp.int32, (B, kk, kk), 0)
    out2 = jnp.where(biota < 2, gsen, gsec)

    # ---- lane-dense packed stores ----------------------------------------------
    newh_ref[...] = new_h.reshape(B, kk * D)                 # (4, 128): unmasked vst
    gg_ref[:, 0:kk * kk] = gsec.reshape(B, kk * kk)
    gg_ref[:, kk * kk:2 * kk * kk] = out2.reshape(B, kk * kk)


def pool_forward(g1, g2, h, w, b, k):
    """Pallas implementation of Pool.forward (inference; dropout == identity)."""
    # TODO(synk): nn.Dropout (training mode) is not reproduced; identity for p==0 / eval.
    B, N, D = h.shape
    assert B == 4, "top_k_graph in the reference hard-codes a batch of 4"
    kk = max(2, k)
    assert kk <= N, "k (clamped to >=2) must not exceed the number of nodes"

    vmem = pl.BlockSpec(memory_space=pltpu.MemorySpace.VMEM)
    smem = pl.BlockSpec(memory_space=pltpu.MemorySpace.SMEM)

    # No wrapper-side dtype casts on the big tensors; the kernel upcasts on load.
    w_row = jnp.reshape(w, (1, D))
    b_vec = jnp.reshape(b, (1,)).astype(jnp.float32)

    newh_flat, gg = pl.pallas_call(
        functools.partial(_pool_kernel, kk=kk),
        out_shape=(
            jax.ShapeDtypeStruct((B, kk * D), jnp.float32),
            jax.ShapeDtypeStruct((B, 2 * kk * kk), jnp.float32),
        ),
        in_specs=[smem, vmem, vmem, vmem, vmem],
        out_specs=(vmem, vmem),
    )(b_vec, g1, g2, h, w_row)

    gsec = gg[:, : kk * kk].reshape(B, kk, kk)
    out2 = gg[:, kk * kk:].reshape(B, kk, kk)
    new_h = newh_flat.reshape(B, kk, D)
    return gsec, out2, new_h


def _pool_reference(g1, g2, h, w, b, k):
    """Pure-JAX reference mirroring the PyTorch module (for validation)."""
    kk = max(2, k)
    logits = jnp.einsum('bnd,d->bn', h, w[:, 0]) + b[0]
    scores = jax.nn.sigmoid(logits)
    values, idx = jax.lax.top_k(scores, kk)
    new_h = jnp.take_along_axis(h, idx[:, :, None], axis=1) * values[:, :, None]
    g1r = jnp.take_along_axis(g1, idx[:, :, None], axis=1)
    g1rc = jnp.take_along_axis(g1r, idx[:, None, :], axis=2)
    g2r = jnp.take_along_axis(g2, idx[:, :, None], axis=1)
    g2rc = jnp.take_along_axis(g2r, idx[:, None, :], axis=2)
    out2 = jnp.concatenate([g2rc[:2], g1rc[2:]], axis=0)
    return g1rc, out2, new_h


if __name__ == "__main__":
    key = jax.random.PRNGKey(0)
    kh, kg1, kg2, kw, kb = jax.random.split(key, 5)

    B, N, D = 4, 8, 32   # batch fixed at 4 by top_k_graph; N nodes; in_dim = 32
    k = 4
    kk = max(2, k)

    h = jax.random.normal(kh, (B, N, D), dtype=jnp.float32)
    g1 = jax.random.normal(kg1, (B, N, N), dtype=jnp.float32)
    g2 = jax.random.normal(kg2, (B, N, N), dtype=jnp.float32)

    # nn.Linear(in_dim, 1) parameters, deterministic init (uniform +/- 1/sqrt(D))
    w = (jax.random.uniform(kw, (D, 1), minval=-1.0, maxval=1.0)
         / math.sqrt(D)).astype(jnp.float32)
    b = (jax.random.uniform(kb, (1,), minval=-1.0, maxval=1.0)
         / math.sqrt(D)).astype(jnp.float32)

    out1, out2, new_h = pool_forward(g1, g2, h, w, b, k)
    jax.block_until_ready((out1, out2, new_h))

    assert out1.shape == (B, kk, kk)
    assert out2.shape == (B, kk, kk)
    assert new_h.shape == (B, kk, D)

    r1, r2, r3 = _pool_reference(g1, g2, h, w, b, k)
    assert bool(jnp.allclose(out1, r1, rtol=1e-4, atol=1e-5)), "gsec mismatch"
    assert bool(jnp.allclose(out2, r2, rtol=1e-4, atol=1e-5)), "out2 mismatch"
    assert bool(jnp.allclose(new_h, r3, rtol=1e-4, atol=1e-5)), "new_h mismatch"

    print("KERNEL_OK")
</pallas_src>

<mosaic_0001>
module attributes {stable_mosaic.version = 11 : i64} {
  func.func @_pool_kernel(%arg0: memref<1xf32, #tpu.memory_space<smem>>, %arg1: memref<4x8x8xf32, #tpu.memory_space<vmem>>, %arg2: memref<4x8x8xf32, #tpu.memory_space<vmem>>, %arg3: memref<4x8x32xf32, #tpu.memory_space<vmem>>, %arg4: memref<1x32xf32, #tpu.memory_space<vmem>>, %arg5: memref<4x128xf32, #tpu.memory_space<vmem>>, %arg6: memref<4x32xf32, #tpu.memory_space<vmem>>) attributes {dimension_semantics = [], scalar_prefetch = 0 : i64, scratch_operands = 0 : i64, tpu.core_type = #tpu.core_type<tc>} {
    %c0 = arith.constant 0 : index
    %c0_0 = arith.constant 0 : index
    %c0_1 = arith.constant 0 : index
    %0 = vector.load %arg3[%c0, %c0_0, %c0_1] : memref<4x8x32xf32, #tpu.memory_space<vmem>>, vector<4x8x32xf32>
    %c0_2 = arith.constant 0 : index
    %c0_3 = arith.constant 0 : index
    %c0_4 = arith.constant 0 : index
    %1 = vector.load %arg1[%c0_2, %c0_3, %c0_4] : memref<4x8x8xf32, #tpu.memory_space<vmem>>, vector<4x8x8xf32>
    %c0_5 = arith.constant 0 : index
    %c0_6 = arith.constant 0 : index
    %c0_7 = arith.constant 0 : index
    %2 = vector.load %arg2[%c0_5, %c0_6, %c0_7] : memref<4x8x8xf32, #tpu.memory_space<vmem>>, vector<4x8x8xf32>
    %c0_8 = arith.constant 0 : index
    %c0_9 = arith.constant 0 : index
    %3 = vector.load %arg4[%c0_8, %c0_9] : memref<1x32xf32, #tpu.memory_space<vmem>>, vector<1x32xf32>
    %4 = vector.shape_cast %3 : vector<1x32xf32> to vector<1x1x32xf32>
    %5 = vector.broadcast %4 : vector<1x1x32xf32> to vector<4x8x32xf32>
    %6 = arith.mulf %0, %5 : vector<4x8x32xf32>
    %cst = arith.constant dense<0.000000e+00> : vector<4x8xf32>
    %7 = vector.multi_reduction <add>, %6, %cst [2] : vector<4x8x32xf32> to vector<4x8xf32>
    %8 = vector.shape_cast %7 : vector<4x8xf32> to vector<4x8x1xf32>
    %9 = vector.shape_cast %7 : vector<4x8xf32> to vector<4x1x8xf32>
    %10 = tpu.iota {dimensions = array<i32: 1>} : vector<4x8x8xi32>
    %11 = tpu.iota {dimensions = array<i32: 2>} : vector<4x8x8xi32>
    %12 = vector.broadcast %9 : vector<4x1x8xf32> to vector<4x8x8xf32>
    %13 = vector.broadcast %8 : vector<4x8x1xf32> to vector<4x8x8xf32>
    %14 = arith.cmpf ogt, %12, %13 : vector<4x8x8xf32>
    %15 = vector.broadcast %9 : vector<4x1x8xf32> to vector<4x8x8xf32>
    %16 = vector.broadcast %8 : vector<4x8x1xf32> to vector<4x8x8xf32>
    %17 = arith.cmpf oeq, %15, %16 : vector<4x8x8xf32>
    %18 = arith.cmpi slt, %11, %10 : vector<4x8x8xi32>
    %19 = arith.andi %17, %18 : vector<4x8x8xi1>
    %20 = arith.ori %14, %19 : vector<4x8x8xi1>
    %21 = arith.extui %20 : vector<4x8x8xi1> to vector<4x8x8xi32>
    %cst_10 = arith.constant dense<0> : vector<4x8xi32>
    %22 = vector.multi_reduction <add>, %21, %cst_10 [2] : vector<4x8x8xi32> to vector<4x8xi32>
    %23 = tpu.iota {dimensions = array<i32: 1>} : vector<4x4x8xi32>
    %24 = vector.shape_cast %22 : vector<4x8xi32> to vector<4x1x8xi32>
    %25 = vector.broadcast %24 : vector<4x1x8xi32> to vector<4x4x8xi32>
    %26 = arith.cmpi eq, %25, %23 : vector<4x4x8xi32>
    %27 = arith.extui %26 : vector<4x4x8xi1> to vector<4x4x8xi32>
    %28 = arith.sitofp %27 : vector<4x4x8xi32> to vector<4x4x8xf32>
    %29 = vector.shape_cast %7 : vector<4x8xf32> to vector<4x1x8xf32>
    %30 = vector.broadcast %29 : vector<4x1x8xf32> to vector<4x4x8xf32>
    %31 = arith.mulf %28, %30 : vector<4x4x8xf32>
    %cst_11 = arith.constant dense<0.000000e+00> : vector<4x4xf32>
    %32 = vector.multi_reduction <add>, %31, %cst_11 [2] : vector<4x4x8xf32> to vector<4x4xf32>
    %c0_12 = arith.constant 0 : index
    %33 = memref.load %arg0[%c0_12] : memref<1xf32, #tpu.memory_space<smem>>
    %34 = vector.broadcast %33 : f32 to vector<4x4xf32>
    %35 = arith.addf %32, %34 : vector<4x4xf32>
    %36 = arith.negf %35 : vector<4x4xf32>
    %37 = math.exp %36 : vector<4x4xf32>
    %cst_13 = arith.constant 1.000000e+00 : f32
    %38 = vector.broadcast %cst_13 : f32 to vector<4x4xf32>
    %39 = arith.addf %38, %37 : vector<4x4xf32>
    %40 = arith.divf %38, %39 : vector<4x4xf32>
    %41 = vector.shape_cast %28 : vector<4x4x8xf32> to vector<4x4x8x1xf32>
    %42 = vector.shape_cast %0 : vector<4x8x32xf32> to vector<4x1x8x32xf32>
    %43 = vector.broadcast %41 : vector<4x4x8x1xf32> to vector<4x4x8x32xf32>
    %44 = vector.broadcast %42 : vector<4x1x8x32xf32> to vector<4x4x8x32xf32>
    %45 = arith.mulf %43, %44 : vector<4x4x8x32xf32>
    %cst_14 = arith.constant dense<0.000000e+00> : vector<4x4x32xf32>
    %46 = vector.multi_reduction <add>, %45, %cst_14 [2] : vector<4x4x8x32xf32> to vector<4x4x32xf32>
    %47 = vector.shape_cast %40 : vector<4x4xf32> to vector<4x4x1xf32>
    %48 = vector.broadcast %47 : vector<4x4x1xf32> to vector<4x4x32xf32>
    %49 = arith.mulf %46, %48 : vector<4x4x32xf32>
    %50 = vector.shape_cast %28 : vector<4x4x8xf32> to vector<4x4x8x1xf32>
    %51 = vector.shape_cast %1 : vector<4x8x8xf32> to vector<4x1x8x8xf32>
    %52 = vector.broadcast %50 : vector<4x4x8x1xf32> to vector<4x4x8x8xf32>
    %53 = vector.broadcast %51 : vector<4x1x8x8xf32> to vector<4x4x8x8xf32>
    %54 = arith.mulf %52, %53 : vector<4x4x8x8xf32>
    %cst_15 = arith.constant dense<0.000000e+00> : vector<4x4x8xf32>
    %55 = vector.multi_reduction <add>, %54, %cst_15 [2] : vector<4x4x8x8xf32> to vector<4x4x8xf32>
    %56 = vector.shape_cast %55 : vector<4x4x8xf32> to vector<4x4x1x8xf32>
    %57 = vector.shape_cast %28 : vector<4x4x8xf32> to vector<4x1x4x8xf32>
    %58 = vector.broadcast %56 : vector<4x4x1x8xf32> to vector<4x4x4x8xf32>
    %59 = vector.broadcast %57 : vector<4x1x4x8xf32> to vector<4x4x4x8xf32>
    %60 = arith.mulf %58, %59 : vector<4x4x4x8xf32>
    %cst_16 = arith.constant dense<0.000000e+00> : vector<4x4x4xf32>
    %61 = vector.multi_reduction <add>, %60, %cst_16 [3] : vector<4x4x4x8xf32> to vector<4x4x4xf32>
    %62 = vector.shape_cast %28 : vector<4x4x8xf32> to vector<4x4x8x1xf32>
    %63 = vector.shape_cast %2 : vector<4x8x8xf32> to vector<4x1x8x8xf32>
    %64 = vector.broadcast %62 : vector<4x4x8x1xf32> to vector<4x4x8x8xf32>
    %65 = vector.broadcast %63 : vector<4x1x8x8xf32> to vector<4x4x8x8xf32>
    %66 = arith.mulf %64, %65 : vector<4x4x8x8xf32>
    %cst_17 = arith.constant dense<0.000000e+00> : vector<4x4x8xf32>
    %67 = vector.multi_reduction <add>, %66, %cst_17 [2] : vector<4x4x8x8xf32> to vector<4x4x8xf32>
    %68 = vector.shape_cast %67 : vector<4x4x8xf32> to vector<4x4x1x8xf32>
    %69 = vector.shape_cast %28 : vector<4x4x8xf32> to vector<4x1x4x8xf32>
    %70 = vector.broadcast %68 : vector<4x4x1x8xf32> to vector<4x4x4x8xf32>
    %71 = vector.broadcast %69 : vector<4x1x4x8xf32> to vector<4x4x4x8xf32>
    %72 = arith.mulf %70, %71 : vector<4x4x4x8xf32>
    %cst_18 = arith.constant dense<0.000000e+00> : vector<4x4x4xf32>
    %73 = vector.multi_reduction <add>, %72, %cst_18 [3] : vector<4x4x4x8xf32> to vector<4x4x4xf32>
    %74 = tpu.iota {dimensions = array<i32: 0>} : vector<4x4x4xi32>
    %c2_i32 = arith.constant 2 : i32
    %75 = vector.broadcast %c2_i32 : i32 to vector<4x4x4xi32>
    %76 = arith.cmpi slt, %74, %75 : vector<4x4x4xi32>
    %77 = arith.select %76, %73, %61 : vector<4x4x4xi1>, vector<4x4x4xf32>
    %78 = vector.shape_cast %49 : vector<4x4x32xf32> to vector<4x128xf32>
    %c0_19 = arith.constant 0 : index
    %c0_20 = arith.constant 0 : index
    %79 = vector.load %arg5[%c0_19, %c0_20] : memref<4x128xf32, #tpu.memory_space<vmem>>, vector<4x128xf32>
    tpu.vector_store %arg5[%c0_19, %c0_20], %78 {strides = array<i32>} : memref<4x128xf32, #tpu.memory_space<vmem>>, vector<4x128xf32>,
    %80 = vector.shape_cast %61 : vector<4x4x4xf32> to vector<4x16xf32>
    %c0_21 = arith.constant 0 : index
    %c0_22 = arith.constant 0 : index
    %81 = vector.load %arg6[%c0_21, %c0_22] : memref<4x32xf32, #tpu.memory_space<vmem>>, vector<4x16xf32>
    tpu.vector_store %arg6[%c0_21, %c0_22], %80 {strides = array<i32>} : memref<4x32xf32, #tpu.memory_space<vmem>>, vector<4x16xf32>,
    %82 = vector.shape_cast %77 : vector<4x4x4xf32> to vector<4x16xf32>
    %c0_23 = arith.constant 0 : index
    %c16 = arith.constant 16 : index
    %83 = vector.load %arg6[%c0_23, %c16] : memref<4x32xf32, #tpu.memory_space<vmem>>, vector<4x16xf32>
    tpu.vector_store %arg6[%c0_23, %c16], %82 {strides = array<i32>} : memref<4x32xf32, #tpu.memory_space<vmem>>, vector<4x16xf32>,
    return
  }
}

</mosaic_0001>

<bundles_post_ra>
// kernel: tpu_custom_call.1
= control target key start
LH: loop header
LB: loop body
LE: loop exit
PB: predicated region body
PF: predicated region fallthrough
CT: control target
= control target key end

     0   :  { %13 = vsyncpa [#allocation4], 0  ;;  %s3507_s0 = inlined_call_operand.<no memory space> [shape: f32[1], index: 0, kind: input, shape index: {}]   ;;  %s3508_s1 = inlined_call_operand.hbm [shape: f32[4,8,8], index: 1, kind: input, shape index: {}]   ;;  %s3509_s2 = inlined_call_operand.hbm [shape: f32[4,8,8], index: 2, kind: input, shape index: {}]   ;;  %s3510_s3 = inlined_call_operand.hbm [shape: f32[4,8,32], index: 3, kind: input, shape index: {}]   ;;  %s3511_s4 = inlined_call_operand.vmem [shape: f32[1,32], index: 4, kind: input, shape index: {}]   ;;  %s3512_s5 = inlined_call_operand.hbm [shape: f32[4,128], index: 5, kind: output, shape index: {0}]   ;;  %s3513_s6 = inlined_call_operand.hbm [shape: f32[4,32], index: 6, kind: output, shape index: {1}]  }
   0x1   :  { %14 = vsyncpa [#allocation7], 0 }
   0x2   :  { %15 = vsyncpa [#allocation5], 0 }
   0x3   :  { %16 = vsyncpa [#allocation11], 0  ;;  %s2445_s21 = smov [#allocation6]   ;;  %s2446_s23 = smov [#allocation3]  }
   0x4   :  { %s36_s22 = sshll.u32 %s2445_s21, 4  ;;  %s24_s24 = sshll.u32 %s2446_s23, 4  ;;  %s37_s22 = int_to_ptr.vmem [resolvable:$true] %s36_s22  ;;  %s25_s24 = int_to_ptr.vmem [resolvable:$true] %s24_s24 }
   0x5   :  { %s2345_s25 = scalar_lea.vmem %s37_s22, 512  ;;  %p2350_p1 = scmp.lt.s32.totalorder %s37_s22, %s37_s22 }
   0x6   :  { %p2346_p0 = scmp.ne.s32.totalorder %s37_s22, %s2345_s25  ;;  %p2351_p2 = scmp.lt.s32.totalorder %s2345_s25, %s2345_s25 }
   0x8   :  { %p2352_p3 = por %p2351_p2, %p2350_p1 }
   0xa   :  { %p2353_p4 = pnand %p2352_p3, %p2346_p0 }
   0xc   :  { %2356 = shalt.err (!%p2353_p4)
}
   0xd   :  { %s2447_s26 = smov 128   ;;  %s2448_s27 = smov 8  }
   0xe   :  { %42 = dma.hbm_to_vmem [thread:$0]  %s3509_s2, 512, %s37_s22, [#allocation7], %s2447_s26, %s2447_s26, %s2448_s27  }
   0xf   :  { %s2365_s30 = scalar_lea.vmem %s25_s24, 512  ;;  %p2370_p6 = scmp.lt.s32.totalorder %s25_s24, %s25_s24 }
  0x10   :  { %p2366_p5 = scmp.ne.s32.totalorder %s25_s24, %s2365_s30  ;;  %p2371_p7 = scmp.lt.s32.totalorder %s2365_s30, %s2365_s30 }
  0x12   :  { %p2372_p8 = por %p2371_p7, %p2370_p6 }
  0x14   :  { %p2373_p9 = pnand %p2372_p8, %p2366_p5 }
  0x16   :  { %2376 = shalt.err (!%p2373_p9)
}
  0x17   :  { %30 = dma.hbm_to_vmem [thread:$0]  %s3508_s1, 512, %s25_s24, [#allocation4], %s2447_s26, %s2447_s26, %s2448_s27  }
  0x18   :  { %s2449_s9 = smov [#allocation8]  }
  0x19   :  { %s48_s10 = sshll.u32 %s2449_s9, 4  ;;  %s49_s10 = int_to_ptr.vmem [resolvable:$true] %s48_s10 }
  0x1a   :  { %s2385_s11 = scalar_lea.vmem %s49_s10, 512  ;;  %p2390_p11 = scmp.lt.s32.totalorder %s49_s10, %s49_s10 }
  0x1b   :  { %p2386_p10 = scmp.ne.s32.totalorder %s49_s10, %s2385_s11  ;;  %p2391_p12 = scmp.lt.s32.totalorder %s2385_s11, %s2385_s11 }
  0x1d   :  { %p2392_p13 = por %p2391_p12, %p2390_p11 }
  0x1f   :  { %p2393_p0 = pnand %p2392_p13, %p2386_p10 }
  0x21   :  { %2396 = shalt.err (!%p2393_p0)
}
  0x22   :  { %54 = dma.hbm_to_vmem [thread:$0]  %s3510_s3, 512, %s49_s10, [#allocation7], %s2447_s26, %s2447_s26, %s2448_s27  }
  0x23   :  { %2437 = dma.done.wait [#allocation4], 512  }
  0x24   :  { %2438 = vsyncadd [#allocation4], 4294966784 }
  0x25   :  { %2439 = dma.done.wait [#allocation7], 1024  }
  0x26   :  { %2440 = vsyncadd [#allocation7], 4294966272  ;;  %v2450_v0 = vmov 0   ;;  %v68_v1 = vld [vmem:[#allocation8 + $0x10] sm:$0xff]  ;;  %v2237_v2 = vld [vmem:[%s3511_s4] ss:$0 sm:$0xff]  ;;  %v102_v14 = vlaneseq }
  0x27   :  { %2276 = vset.pattern.permute.xlu1 %v2450_v0  ;;  %2275 = vset.pattern.permute.xlu0 %v2450_v0  ;;  %vm89_vm0 = vcmask 261120   ;;  %v66_v3 = vld [vmem:[#allocation8] sm:$0xff]  ;;  %v87_v4 = vmul.f32 %v2237_v2, %v68_v1  ;;  %v69_v6 = vld [vmem:[#allocation8 + $0x18] sm:$0xff]  ;;  %v67_v7 = vld [vmem:[#allocation8 + $0x8] sm:$0xff]  ;;  %s2455_s14 = smov 12   ;;  %s2456_s15 = smov 64  }
  0x28   :  { %v85_v5 = vmul.f32 %v2237_v2, %v66_v3  ;;  %v88_v8 = vmul.f32 %v2237_v2, %v69_v6  ;;  %v86_v9 = vmul.f32 %v2237_v2, %v67_v7  ;;  %v2518_v15 = vshrl.u32 %v102_v14, 7  ;;  %s2457_s16 = smov 32   ;;  %s2458_s17 = smov 96  }
  0x29   :  { %v96_v10 = vsel %vm89_vm0, %v87_v4, 0.0  ;;  %v2520_v16 = vand.u32 127, %v102_v14  ;;  %s2459_s18 = smov 16   ;;  %s2460_s19 = smov [#allocation9]  }
  0x2a   :  { %v90_v11 = vsel %vm89_vm0, %v85_v5, 0.0  ;;  %97 = vadd.xlane.f32.xlu1 %v96_v10  ;;  %v99_v12 = vsel %vm89_vm0, %v88_v8, 0.0  ;;  %v93_v13 = vsel %vm89_vm0, %v86_v9, 0.0  ;;  %3523 = vst [vmem:[#allocation16_spill] sm:$0xff] %v2518_v15  ;;  %v2525_v17 = vsub.s32 1, %v2518_v15  ;;  %s2213_s20 = sshll.u32 %s2460_s19, 4  ;;  %s2214_s20 = int_to_ptr.vmem [resolvable:$true] %s2213_s20 }
  0x2b   :  { %91 = vadd.xlane.f32.xlu0 %v90_v11  ;;  %vm334_vm1 = vcmp.lt.s32.totalorder %v2520_v16, %v2518_v15  ;;  %v2530_v20 = vsub.s32 2, %v2518_v15  ;;  %v2533_v21 = vsub.s32 0, %v2518_v15  ;;  %v2537_v23 = vsub.s32 3, %v2518_v15  ;;  %s2397_s21 = scalar_lea.vmem %s2214_s20, 64  ;;  %p2402_p2 = scmp.lt.s32.totalorder %s2214_s20, %s2214_s20 }
  0x2c   :  { %v335_v18 = vsel %vm334_vm1, 1, %v2450_v0  ;;  %v2541_v25 = vsub.s32 4, %v2518_v15  ;;  %v2545_v27 = vsub.s32 5, %v2518_v15  ;;  %v2549_v29 = vsub.s32 6, %v2518_v15  ;;  %p2398_p1 = scmp.ne.s32.totalorder %s2214_s20, %s2397_s21  ;;  %p2403_p3 = scmp.lt.s32.totalorder %s2397_s21, %s2397_s21 }
  0x2d   :  { %v346_v19 = vrot.slane %v335_v18, %v2525_v17  ;;  %v353_v22 = vrot.slane %v335_v18, %v2530_v20  ;;  %v339_v24 = vrot.slane %v335_v18, %v2533_v21  ;;  %v360_v26 = vrot.slane %v335_v18, %v2537_v23 }
  0x2e   :  { %100 = vadd.xlane.f32.xlu1 %v99_v12  ;;  %v367_v28 = vrot.slane %v335_v18, %v2541_v25  ;;  %v374_v30 = vrot.slane %v335_v18, %v2545_v27  ;;  %v2553_v31 = vsub.s32 7, %v2518_v15  ;;  %v381_v32 = vrot.slane %v335_v18, %v2549_v29  ;;  %p2404_p4 = por %p2403_p3, %p2402_p2 }
  0x2f   :  { %94 = vadd.xlane.f32.xlu0 %v93_v13 }
  0x30   :  { %v388_v33 = vrot.slane %v335_v18, %v2553_v31  ;;  %p2405_p5 = pnand %p2404_p4, %p2398_p1 }
  0x3f   :  { %348 = vbcast.lane.b32.xlu1 %v346_v19, 256 }
  0x43   :  { %355 = vbcast.lane.b32.xlu1 %v353_v22, 256 }
  0x45   :  { %341 = vbcast.lane.b32.xlu0 %v339_v24, 256 }
  0x47   :  { %362 = vbcast.lane.b32.xlu1 %v360_v26, 256 }
  0x49   :  { %369 = vbcast.lane.b32.xlu0 %v367_v28, 256 }
  0x4b   :  { %376 = vbcast.lane.b32.xlu1 %v374_v30, 256 }
  0x4d   :  { %383 = vbcast.lane.b32.xlu0 %v381_v32, 256 }
  0x4f   :  { %390 = vbcast.lane.b32.xlu1 %v388_v33, 256 }
  0xb3   :  { %v2557_v34 = vpop.xlane.xlu1 %97 }
  0xb4   :  { %v2559_v35 = vpop.xlane.xlu0 %91  ;;  %v177_v45 = vrot.slane %v2557_v34, %v2533_v21  ;;  %v181_v47 = vrot.slane %v2557_v34, %v2525_v17  ;;  %v185_v58 = vrot.slane %v2557_v34, %v2530_v20  ;;  %v189_v4 = vrot.slane %v2557_v34, %v2537_v23 }
  0xb5   :  { %v117_v38 = vrot.slane %v2559_v35, %v2525_v17  ;;  %v113_v39 = vrot.slane %v2559_v35, %v2533_v21  ;;  %v121_v54 = vrot.slane %v2559_v35, %v2530_v20  ;;  %v125_v63 = vrot.slane %v2559_v35, %v2537_v23 }
  0xb6   :  { %v129_v11 = vrot.slane %v2559_v35, %v2541_v25  ;;  %v193_v18 = vrot.slane %v2557_v34, %v2541_v25  ;;  %v197_v33 = vrot.slane %v2557_v34, %v2545_v27 }
  0xb7   :  { %v2561_v36 = vpop.xlane.xlu1 %100  ;;  %vm303_vm4 = vcmp.eq.f32.partialorder %v2559_v35, %v117_v38  ;;  %vm271_vm5 = vcmp.gt.f32.partialorder %v2559_v35, %v117_v38  ;;  %vm302_vm8 = vcmp.eq.f32.partialorder %v2559_v35, %v113_v39  ;;  %vm270_vm9 = vcmp.gt.f32.partialorder %v2559_v35, %v113_v39 }
  0xb8   :  { %v2563_v37 = vpop.xlane.xlu0 %94  ;;  %v209_v49 = vrot.slane %v2561_v36, %v2533_v21  ;;  %v213_v51 = vrot.slane %v2561_v36, %v2525_v17  ;;  %v217_v60 = vrot.slane %v2561_v36, %v2530_v20  ;;  %v221_v6 = vrot.slane %v2561_v36, %v2537_v23 }
  0xb9   :  { %v145_v42 = vrot.slane %v2563_v37, %v2533_v21  ;;  %v149_v43 = vrot.slane %v2563_v37, %v2525_v17  ;;  %v153_v56 = vrot.slane %v2563_v37, %v2530_v20  ;;  %v157_v2 = vrot.slane %v2563_v37, %v2537_v23 }
  0xba   :  { %v161_v9 = vrot.slane %v2563_v37, %v2541_v25  ;;  %v225_v13 = vrot.slane %v2561_v36, %v2541_v25  ;;  %v165_v22 = vrot.slane %v2563_v37, %v2545_v27  ;;  %v133_v25 = vrot.slane %v2559_v35, %v2545_v27 }
  0xbb   :  { %v349_v40 = vpop.permute.xlu1 %348  ;;  %vm310_vm12 = vcmp.eq.f32.partialorder %v2563_v37, %v145_v42  ;;  %vm278_vm13 = vcmp.gt.f32.partialorder %v2563_v37, %v145_v42  ;;  %vm311_vm1 = vcmp.eq.f32.partialorder %v2563_v37, %v149_v43  ;;  %v229_v28 = vrot.slane %v2561_v36, %v2545_v27 }
  0xbc   :  { %v342_v41 = vpop.permute.xlu0 %341  ;;  %vm393_vm2 = vcmp.ne.s32.totalorder %v349_v40, 0  ;;  %v169_v39 = vrot.slane %v2563_v37, %v2549_v29  ;;  %v137_v27 = vrot.slane %v2559_v35, %v2549_v29  ;;  %v233_v42 = vrot.slane %v2561_v36, %v2549_v29 }
  0xbd   :  { %vm392_vm3 = vcmp.ne.s32.totalorder %v342_v41, 0  ;;  %vm401_vm6 = vmand %vm303_vm4, %vm393_vm2  ;;  %vm279_vm4 = vcmp.gt.f32.partialorder %v2563_v37, %v149_v43 }
  0xbe   :  { %vm433_vm7 = vmor %vm271_vm5, %vm401_vm6 }
  0xbf   :  { %v465_v44 = vsel %vm433_vm7, 1, %v2450_v0  ;;  %vm400_vm10 = vmand %vm302_vm8, %vm392_vm3  ;;  %vm318_vm7 = vcmp.eq.f32.partialorder %v2557_v34, %v177_v45  ;;  %vm286_vm8 = vcmp.gt.f32.partialorder %v2557_v34, %v177_v45  ;;  %v356_v52 = vpop.permute.xlu1 %355  ;;  %v201_v45 = vrot.slane %v2557_v34, %v2549_v29 }
  0xc0   :  { %500 = vperm.xlu1 %2276, %v465_v44   ;;  %vm432_vm11 = vmor %vm270_vm9, %vm400_vm10  ;;  %v370_v7 = vpop.permute.xlu0 %369  ;;  %v141_v29 = vrot.slane %v2559_v35, %v2553_v31 }
  0xc1   :  { %v464_v46 = vsel %vm432_vm11, 1, %v2450_v0  ;;  %vm408_vm14 = vmand %vm310_vm12, %vm392_vm3  ;;  %vm319_vm11 = vcmp.eq.f32.partialorder %v2557_v34, %v181_v47  ;;  %vm287_vm12 = vcmp.gt.f32.partialorder %v2557_v34, %v181_v47  ;;  %v173_v47 = vrot.slane %v2563_v37, %v2553_v31 }
  0xc2   :  { %497 = vperm.xlu0 %2275, %v464_v46   ;;  %vm440_vm15 = vmor %vm278_vm13, %vm408_vm14 }
  0xc3   :  { %v472_v48 = vsel %vm440_vm15, 1, %v2450_v0  ;;  %vm409_vm5 = vmand %vm311_vm1, %vm393_vm2  ;;  %vm326_vm15 = vcmp.eq.f32.partialorder %v2561_v36, %v209_v49  ;;  %vm294_vm1 = vcmp.gt.f32.partialorder %v2561_v36, %v209_v49  ;;  %v363_v61 = vpop.permute.xlu1 %362 }
  0xc4   :  { %521 = vperm.xlu1 %2276, %v472_v48   ;;  %vm441_vm6 = vmor %vm279_vm4, %vm409_vm5  ;;  %vm394_vm5 = vcmp.ne.s32.totalorder %v356_v52, 0  ;;  %v384_v38 = vpop.permute.xlu0 %383 }
  0xc5   :  { %v473_v50 = vsel %vm441_vm6, 1, %v2450_v0  ;;  %vm416_vm9 = vmand %vm318_vm7, %vm392_vm3  ;;  %vm327_vm7 = vcmp.eq.f32.partialorder %v2561_v36, %v213_v51 }
  0xc6   :  { %524 = vperm.xlu0 %2275, %v473_v50   ;;  %vm448_vm10 = vmor %vm286_vm8, %vm416_vm9  ;;  %vm295_vm8 = vcmp.gt.f32.partialorder %v2561_v36, %v213_v51  ;;  %v237_v50 = vrot.slane %v2561_v36, %v2553_v31 }
  0xc7   :  { %v480_v53 = vsel %vm448_vm10, 1, %v2450_v0  ;;  %vm417_vm13 = vmand %vm319_vm11, %vm393_vm2  ;;  %vm304_vm11 = vcmp.eq.f32.partialorder %v2559_v35, %v121_v54  ;;  %v377_v19 = vpop.permute.xlu1 %376 }
  0xc8   :  { %545 = vperm.xlu1 %2276, %v480_v53   ;;  %vm449_vm14 = vmor %vm287_vm12, %vm417_vm13  ;;  %v205_v53 = vrot.slane %v2557_v34, %v2553_v31 }
  0xc9   :  { %v481_v55 = vsel %vm449_vm14, 1, %v2450_v0  ;;  %vm424_vm4 = vmand %vm326_vm15, %vm392_vm3  ;;  %vm272_vm3 = vcmp.gt.f32.partialorder %v2559_v35, %v121_v54  ;;  %vm312_vm14 = vcmp.eq.f32.partialorder %v2563_v37, %v153_v56 }
  0xca   :  { %548 = vperm.xlu0 %2275, %v481_v55   ;;  %vm456_vm6 = vmor %vm294_vm1, %vm424_vm4  ;;  %vm320_vm4 = vcmp.eq.f32.partialorder %v2557_v34, %v185_v58 }
  0xcb   :  { %v488_v57 = vsel %vm456_vm6, 1, %v2450_v0  ;;  %vm425_vm9 = vmand %vm327_vm7, %vm393_vm2  ;;  %vm280_vm2 = vcmp.gt.f32.partialorder %v2563_v37, %v153_v56  ;;  %vm288_vm6 = vcmp.gt.f32.partialorder %v2557_v34, %v185_v58  ;;  %v391_v46 = vpop.permute.xlu1 %390 }
  0xcc   :  { %569 = vperm.xlu1 %2276, %v488_v57   ;;  %vm457_vm10 = vmor %vm295_vm8, %vm425_vm9  ;;  %vm395_vm8 = vcmp.ne.s32.totalorder %v363_v61, 0 }
  0xcd   :  { %v489_v59 = vsel %vm457_vm10, 1, %v2450_v0  ;;  %vm402_vm12 = vmand %vm304_vm11, %vm394_vm5  ;;  %vm328_vm10 = vcmp.eq.f32.partialorder %v2561_v36, %v217_v60  ;;  %vm296_vm11 = vcmp.gt.f32.partialorder %v2561_v36, %v217_v60 }
  0xce   :  { %572 = vperm.xlu0 %2275, %v489_v59   ;;  %vm434_vm13 = vmor %vm272_vm3, %vm402_vm12 }
  0xcf   :  { %v466_v62 = vsel %vm434_vm13, 1, %v2450_v0  ;;  %vm410_vm15 = vmand %vm312_vm14, %vm394_vm5  ;;  %vm305_vm13 = vcmp.eq.f32.partialorder %v2559_v35, %v125_v63  ;;  %vm273_vm14 = vcmp.gt.f32.partialorder %v2559_v35, %v125_v63 }
  0xd0   :  { %503 = vperm.xlu1 %2276, %v466_v62   ;;  %vm442_vm1 = vmor %vm280_vm2, %vm410_vm15 }
  0xd1   :  { %v474_v1 = vsel %vm442_vm1, 1, %v2450_v0  ;;  %vm418_vm7 = vmand %vm320_vm4, %vm394_vm5  ;;  %vm313_vm1 = vcmp.eq.f32.partialorder %v2563_v37, %v157_v2 }
  0xd2   :  { %527 = vperm.xlu0 %2275, %v474_v1   ;;  %vm450_vm9 = vmor %vm288_vm6, %vm418_vm7  ;;  %vm321_vm7 = vcmp.eq.f32.partialorder %v2557_v34, %v189_v4 }
  0xd3   :  { %v482_v3 = vsel %vm450_vm9, 1, %v2450_v0  ;;  %vm426_vm3 = vmand %vm328_vm10, %vm394_vm5  ;;  %vm281_vm5 = vcmp.gt.f32.partialorder %v2563_v37, %v157_v2  ;;  %vm289_vm9 = vcmp.gt.f32.partialorder %v2557_v34, %v189_v4 }
  0xd4   :  { %551 = vperm.xlu1 %2276, %v482_v3   ;;  %vm458_vm12 = vmor %vm296_vm11, %vm426_vm3  ;;  %vm396_vm11 = vcmp.ne.s32.totalorder %v370_v7, 0 }
  0xd5   :  { %v490_v5 = vsel %vm458_vm12, 1, %v2450_v0  ;;  %vm403_vm2 = vmand %vm305_vm13, %vm395_vm8  ;;  %vm329_vm12 = vcmp.eq.f32.partialorder %v2561_v36, %v221_v6  ;;  %vm297_vm13 = vcmp.gt.f32.partialorder %v2561_v36, %v221_v6 }
  0xd6   :  { %575 = vperm.xlu0 %2275, %v490_v5   ;;  %vm435_vm15 = vmor %vm273_vm14, %vm403_vm2 }
  0xd7   :  { %v467_v8 = vsel %vm435_vm15, 1, %v2450_v0  ;;  %vm411_vm4 = vmand %vm313_vm1, %vm395_vm8  ;;  %vm314_vm15 = vcmp.eq.f32.partialorder %v2563_v37, %v161_v9  ;;  %vm282_vm1 = vcmp.gt.f32.partialorder %v2563_v37, %v161_v9 }
  0xd8   :  { %506 = vperm.xlu1 %2276, %v467_v8   ;;  %vm443_vm6 = vmor %vm281_vm5, %vm411_vm4 }
  0xd9   :  { %v475_v10 = vsel %vm443_vm6, 1, %v2450_v0  ;;  %vm419_vm10 = vmand %vm321_vm7, %vm395_vm8  ;;  %vm306_vm6 = vcmp.eq.f32.partialorder %v2559_v35, %v129_v11 }
  0xda   :  { %530 = vperm.xlu0 %2275, %v475_v10   ;;  %vm451_vm3 = vmor %vm289_vm9, %vm419_vm10  ;;  %vm330_vm10 = vcmp.eq.f32.partialorder %v2561_v36, %v225_v13 }
  0xdb   :  { %v483_v12 = vsel %vm451_vm3, 1, %v2450_v0  ;;  %vm427_vm14 = vmand %vm329_vm12, %vm395_vm8  ;;  %vm274_vm8 = vcmp.gt.f32.partialorder %v2559_v35, %v129_v11  ;;  %vm298_vm3 = vcmp.gt.f32.partialorder %v2561_v36, %v225_v13 }
  0xdc   :  { %554 = vperm.xlu1 %2276, %v483_v12   ;;  %vm459_vm2 = vmor %vm297_vm13, %vm427_vm14  ;;  %vm397_vm13 = vcmp.ne.s32.totalorder %v377_v19, 0 }
  0xdd   :  { %v491_v14 = vsel %vm459_vm2, 1, %v2450_v0  ;;  %vm412_vm5 = vmand %vm314_vm15, %vm396_vm11  ;;  %vm322_vm2 = vcmp.eq.f32.partialorder %v2557_v34, %v193_v18  ;;  %vm290_vm15 = vcmp.gt.f32.partialorder %v2557_v34, %v193_v18  ;;  %v2763_v18 = vsub.s32 %v2520_v16, %v2518_v15 }
  0xde   :  { %578 = vperm.xlu0 %2275, %v491_v14   ;;  %vm444_vm4 = vmor %vm282_vm1, %vm412_vm5 }
  0xdf   :  { %vm404_vm7 = vmand %vm306_vm6, %vm396_vm11  ;;  %v476_v24 = vsel %vm444_vm4, 1, %v2450_v0  ;;  %vm315_vm4 = vcmp.eq.f32.partialorder %v2563_v37, %v165_v22  ;;  %vm283_vm6 = vcmp.gt.f32.partialorder %v2563_v37, %v165_v22 }
  0xe0   :  { %vm436_vm9 = vmor %vm274_vm8, %vm404_vm7 }
  0xe1   :  { %v468_v26 = vsel %vm436_vm9, 1, %v2450_v0  ;;  %vm428_vm12 = vmand %vm330_vm10, %vm396_vm11  ;;  %vm307_vm9 = vcmp.eq.f32.partialorder %v2559_v35, %v133_v25 }
  0xe2   :  { %533 = vperm.xlu0 %2275, %v476_v24   ;;  %509 = vperm.xlu1 %2276, %v468_v26   ;;  %vm460_vm14 = vmor %vm298_vm3, %vm428_vm12  ;;  %vm331_vm12 = vcmp.eq.f32.partialorder %v2561_v36, %v229_v28 }
  0xe3   :  { %vm420_vm1 = vmand %vm322_vm2, %vm396_vm11  ;;  %v492_v30 = vsel %vm460_vm14, 1, %v2450_v0  ;;  %vm275_vm11 = vcmp.gt.f32.partialorder %v2559_v35, %v133_v25  ;;  %vm299_vm14 = vcmp.gt.f32.partialorder %v2561_v36, %v229_v28 }
  0xe4   :  { %vm452_vm5 = vmor %vm290_vm15, %vm420_vm1  ;;  %vm398_vm15 = vcmp.ne.s32.totalorder %v384_v38, 0 }
  0xe5   :  { %v484_v32 = vsel %vm452_vm5, 1, %v2450_v0  ;;  %vm413_vm8 = vmand %vm315_vm4, %vm397_vm13  ;;  %vm323_vm5 = vcmp.eq.f32.partialorder %v2557_v34, %v197_v33  ;;  %vm291_vm4 = vcmp.gt.f32.partialorder %v2557_v34, %v197_v33 }
  0xe6   :  { %581 = vperm.xlu0 %2275, %v492_v30   ;;  %557 = vperm.xlu1 %2276, %v484_v32   ;;  %vm445_vm7 = vmor %vm283_vm6, %vm413_vm8 }
  0xe7   :  { %vm405_vm10 = vmand %vm307_vm9, %vm397_vm13  ;;  %v477_v40 = vsel %vm445_vm7, 1, %v2450_v0  ;;  %vm316_vm7 = vcmp.eq.f32.partialorder %v2563_v37, %v169_v39  ;;  %vm284_vm9 = vcmp.gt.f32.partialorder %v2563_v37, %v169_v39 }
  0xe8   :  { %vm437_vm3 = vmor %vm275_vm11, %vm405_vm10 }
  0xe9   :  { %v469_v41 = vsel %vm437_vm3, 1, %v2450_v0  ;;  %vm429_vm2 = vmand %vm331_vm12, %vm397_vm13  ;;  %vm308_vm3 = vcmp.eq.f32.partialorder %v2559_v35, %v137_v27 }
  0xea   :  { %536 = vperm.xlu0 %2275, %v477_v40   ;;  %512 = vperm.xlu1 %2276, %v469_v41   ;;  %vm461_vm1 = vmor %vm299_vm14, %vm429_vm2  ;;  %vm332_vm2 = vcmp.eq.f32.partialorder %v2561_v36, %v233_v42 }
  0xeb   :  { %vm421_vm6 = vmand %vm323_vm5, %vm397_vm13  ;;  %v493_v43 = vsel %vm461_vm1, 1, %v2450_v0  ;;  %vm276_vm13 = vcmp.gt.f32.partialorder %v2559_v35, %v137_v27  ;;  %vm300_vm1 = vcmp.gt.f32.partialorder %v2561_v36, %v233_v42 }
  0xec   :  { %vm453_vm8 = vmor %vm291_vm4, %vm421_vm6  ;;  %vm399_vm4 = vcmp.ne.s32.totalorder %v391_v46, 0 }
  0xed   :  { %v485_v44 = vsel %vm453_vm8, 1, %v2450_v0  ;;  %vm414_vm11 = vmand %vm316_vm7, %vm398_vm15  ;;  %vm324_vm8 = vcmp.eq.f32.partialorder %v2557_v34, %v201_v45  ;;  %vm292_vm7 = vcmp.gt.f32.partialorder %v2557_v34, %v201_v45 }
  0xee   :  { %584 = vperm.xlu0 %2275, %v493_v43   ;;  %560 = vperm.xlu1 %2276, %v485_v44   ;;  %vm446_vm10 = vmor %vm284_vm9, %vm414_vm11 }
  0xef   :  { %vm406_vm12 = vmand %vm308_vm3, %vm398_vm15  ;;  %v478_v48 = vsel %vm446_vm10, 1, %v2450_v0  ;;  %vm317_vm10 = vcmp.eq.f32.partialorder %v2563_v37, %v173_v47  ;;  %vm285_vm3 = vcmp.gt.f32.partialorder %v2563_v37, %v173_v47 }
  0xf0   :  { %vm438_vm14 = vmor %vm276_vm13, %vm406_vm12 }
  0xf1   :  { %v470_v49 = vsel %vm438_vm14, 1, %v2450_v0  ;;  %vm430_vm5 = vmand %vm332_vm2, %vm398_vm15  ;;  %vm309_vm14 = vcmp.eq.f32.partialorder %v2559_v35, %v141_v29 }
  0xf2   :  { %539 = vperm.xlu0 %2275, %v478_v48   ;;  %515 = vperm.xlu1 %2276, %v470_v49   ;;  %vm462_vm6 = vmor %vm300_vm1, %vm430_vm5  ;;  %vm333_vm5 = vcmp.eq.f32.partialorder %v2561_v36, %v237_v50 }
  0xf3   :  { %vm422_vm9 = vmand %vm324_vm8, %vm398_vm15  ;;  %v494_v51 = vsel %vm462_vm6, 1, %v2450_v0  ;;  %vm277_vm15 = vcmp.gt.f32.partialorder %v2559_v35, %v141_v29  ;;  %vm301_vm6 = vcmp.gt.f32.partialorder %v2561_v36, %v237_v50 }
  0xf4   :  { %vm454_vm11 = vmor %vm292_vm7, %vm422_vm9  ;;  %vm325_vm9 = vcmp.eq.f32.partialorder %v2557_v34, %v205_v53 }
  0xf5   :  { %v486_v52 = vsel %vm454_vm11, 1, %v2450_v0  ;;  %vm415_vm13 = vmand %vm317_vm10, %vm399_vm4  ;;  %vm293_vm11 = vcmp.gt.f32.partialorder %v2557_v34, %v205_v53 }
  0xf6   :  { %587 = vperm.xlu0 %2275, %v494_v51   ;;  %563 = vperm.xlu1 %2276, %v486_v52   ;;  %vm447_vm12 = vmor %vm285_vm3, %vm415_vm13  ;;  %vm722_vm13 = vcmask 1042434  }
  0xf7   :  { %vm407_vm2 = vmand %vm309_vm14, %vm399_vm4  ;;  %v479_v54 = vsel %vm447_vm12, 1, %v2450_v0  ;;  %vm724_vm12 = vcmask 1043459   ;;  %vm726_vm14 = vcmask 1044484  }
  0xf8   :  { %vm439_vm1 = vmor %vm277_vm15, %vm407_vm2  ;;  %vm728_vm15 = vcmask 1045509   ;;  %vm730_vm2 = vcmask 1046534  }
  0xf9   :  { %v471_v55 = vsel %vm439_vm1, 1, %v2450_v0  ;;  %vm431_vm8 = vmand %vm333_vm5, %vm399_vm4  ;;  %vm732_vm1 = vcmask 1047559   ;;  %vm755_vm5 = vcmask 64512  }
  0xfa   :  { %542 = vperm.xlu0 %2275, %v479_v54   ;;  %518 = vperm.xlu1 %2276, %v471_v55   ;;  %vm463_vm7 = vmor %vm301_vm6, %vm431_vm8 }
  0xfb   :  { %vm423_vm10 = vmand %vm325_vm9, %vm399_vm4  ;;  %v495_v31 = vsel %vm463_vm7, 1, %v2450_v0  ;;  %vm720_vm4 = vcmask 1041409  }
  0xfc   :  { %vm455_vm3 = vmor %vm293_vm11, %vm423_vm10 }
  0xfd   :  { %v487_v56 = vsel %vm455_vm3, 1, %v2450_v0 }
  0xfe   :  { %590 = vperm.xlu0 %2275, %v495_v31   ;;  %566 = vperm.xlu1 %2276, %v487_v56  }
 0x13b   :  { %v501_v57 = vpop.permute.xlu1 %500 }
 0x13c   :  { %v599_v24 = vrot.slane %v501_v57, %v2763_v18 }
 0x13d   :  { %v498_v58 = vpop.permute.xlu0 %497 }
 0x13e   :  { %v595_v26 = vrot.slane %v498_v58, %v2763_v18 }
 0x13f   :  { %v522_v59 = vpop.permute.xlu1 %521 }
 0x140   :  { %v627_v25 = vrot.slane %v522_v59, %v2763_v18  ;;  %v721_v43 = vsel %vm720_vm4, %v599_v24, %v595_v26 }
 0x141   :  { %v525_v60 = vpop.permute.xlu0 %524 }
 0x142   :  { %v631_v28 = vrot.slane %v525_v60, %v2763_v18 }
 0x143   :  { %v546_v61 = vpop.permute.xlu1 %545 }
 0x144   :  { %v659_v30 = vrot.slane %v546_v61, %v2763_v18  ;;  %v734_v44 = vsel %vm720_vm4, %v631_v28, %v627_v25 }
 0x145   :  { %v549_v62 = vpop.permute.xlu0 %548 }
 0x146   :  { %v663_v16 = vrot.slane %v549_v62, %v2763_v18 }
 0x147   :  { %v570_v63 = vpop.permute.xlu1 %569 }
 0x148   :  { %v691_v32 = vrot.slane %v570_v63, %v2763_v18  ;;  %v741_v47 = vsel %vm720_vm4, %v663_v16, %v659_v30 }
 0x149   :  { %v573_v1 = vpop.permute.xlu0 %572 }
 0x14a   :  { %v695_v33 = vrot.slane %v573_v1, %v2763_v18 }
 0x14b   :  { %v504_v2 = vpop.permute.xlu1 %503 }
 0x14c   :  { %v603_v38 = vrot.slane %v504_v2, %v2763_v18  ;;  %v748_v48 = vsel %vm720_vm4, %v695_v33, %v691_v32 }
 0x14d   :  { %v528_v3 = vpop.permute.xlu0 %527 }
 0x14e   :  { %v635_v39 = vrot.slane %v528_v3, %v2763_v18  ;;  %v723_v50 = vsel %vm722_vm13, %v603_v38, %v721_v43 }
 0x14f   :  { %v552_v4 = vpop.permute.xlu1 %551 }
 0x150   :  { %v667_v27 = vrot.slane %v552_v4, %v2763_v18  ;;  %v735_v51 = vsel %vm722_vm13, %v635_v39, %v734_v44 }
 0x151   :  { %v576_v5 = vpop.permute.xlu0 %575 }
 0x152   :  { %v699_v42 = vrot.slane %v576_v5, %v2763_v18  ;;  %v742_v31 = vsel %vm722_vm13, %v667_v27, %v741_v47 }
 0x153   :  { %v507_v6 = vpop.permute.xlu1 %506 }
 0x154   :  { %v607_v45 = vrot.slane %v507_v6, %v2763_v18  ;;  %v749_v56 = vsel %vm722_vm13, %v699_v42, %v748_v48 }
 0x155   :  { %v531_v7 = vpop.permute.xlu0 %530 }
 0x156   :  { %v639_v46 = vrot.slane %v531_v7, %v2763_v18  ;;  %v725_v59 = vsel %vm724_vm12, %v607_v45, %v723_v50 }
 0x157   :  { %v555_v8 = vpop.permute.xlu1 %554 }
 0x158   :  { %v671_v49 = vrot.slane %v555_v8, %v2763_v18  ;;  %v736_v60 = vsel %vm724_vm12, %v639_v46, %v735_v51 }
 0x159   :  { %v579_v9 = vpop.permute.xlu0 %578 }
 0x15a   :  { %v703_v29 = vrot.slane %v579_v9, %v2763_v18  ;;  %v743_v63 = vsel %vm724_vm12, %v671_v49, %v742_v31 }
 0x15c   :  { %v750_v1 = vsel %vm724_vm12, %v703_v29, %v749_v56 }
 0x15d   :  { %v510_v10 = vpop.permute.xlu1 %509  ;;  %v534_v0 = vpop.permute.xlu0 %533 }
 0x15e   :  { %v611_v52 = vrot.slane %v510_v10, %v2763_v18  ;;  %v643_v53 = vrot.slane %v534_v0, %v2763_v18 }
 0x160   :  { %v727_v4 = vsel %vm726_vm14, %v611_v52, %v725_v59  ;;  %v737_v5 = vsel %vm726_vm14, %v643_v53, %v736_v60 }
 0x161   :  { %v2757_v11 = vpop.permute.xlu1 %557  ;;  %v2759_v12 = vpop.permute.xlu0 %581 }
 0x162   :  { %v675_v2 = vrot.slane %v2757_v11, %v2763_v18  ;;  %v707_v3 = vrot.slane %v2759_v12, %v2763_v18 }
 0x164   :  { %v751_v26 = vsel %vm726_vm14, %v707_v3, %v750_v1  ;;  %v811_v3 = vrot.slane %v2518_v15, %v2533_v21 }
 0x165   :  { %v513_v13 = vpop.permute.xlu1 %512  ;;  %v537_v14 = vpop.permute.xlu0 %536 }
 0x166   :  { %v615_v57 = vrot.slane %v513_v13, %v2763_v18  ;;  %v647_v58 = vrot.slane %v537_v14, %v2763_v18 }
 0x168   :  { %v729_v10 = vsel %vm728_vm15, %v615_v57, %v727_v4  ;;  %v738_v0 = vsel %vm728_vm15, %v647_v58, %v737_v5 }
 0x169   :  { %v2765_v19 = vpop.permute.xlu1 %560  ;;  %v2767_v22 = vpop.permute.xlu0 %584 }
 0x16a   :  { %v679_v6 = vrot.slane %v2765_v19, %v2763_v18  ;;  %v711_v7 = vrot.slane %v2767_v22, %v2763_v18  ;;  %v744_v22 = vsel %vm726_vm14, %v675_v2, %v743_v63 }
 0x16c   :  { %v745_v30 = vsel %vm728_vm15, %v679_v6, %v744_v22  ;;  %v752_v16 = vsel %vm728_vm15, %v711_v7, %v751_v26  ;;  %v815_v7 = vrot.slane %v2518_v15, %v2525_v17 }
 0x16d   :  { %v516_v40 = vpop.permute.xlu1 %515  ;;  %v540_v41 = vpop.permute.xlu0 %539 }
 0x16e   :  { %v619_v61 = vrot.slane %v516_v40, %v2763_v18  ;;  %v651_v62 = vrot.slane %v540_v41, %v2763_v18 }
 0x170   :  { %v731_v13 = vsel %vm730_vm2, %v619_v61, %v729_v10  ;;  %v739_v14 = vsel %vm730_vm2, %v651_v62, %v738_v0 }
 0x171   :  { %v564_v54 = vpop.permute.xlu1 %563  ;;  %v588_v55 = vpop.permute.xlu0 %587 }
 0x172   :  { %v683_v24 = vrot.slane %v564_v54, %v2763_v18  ;;  %v715_v19 = vrot.slane %v588_v55, %v2763_v18 }
 0x174   :  { %v746_v43 = vsel %vm730_vm2, %v683_v24, %v745_v30  ;;  %v753_v44 = vsel %vm730_vm2, %v715_v19, %v752_v16 }
 0x175   :  { %v519_v8 = vpop.permute.xlu1 %518  ;;  %v543_v9 = vpop.permute.xlu0 %542 }
 0x176   :  { %v623_v11 = vrot.slane %v519_v8, %v2763_v18  ;;  %v655_v12 = vrot.slane %v543_v9, %v2763_v18 }
 0x178   :  { %v733_v25 = vsel %vm732_vm1, %v623_v11, %v731_v13  ;;  %v740_v28 = vsel %vm732_vm1, %v655_v12, %v739_v14  ;;  %v3514_v13 = vmov 0.0  }
 0x179   :  { %v567_v32 = vpop.permute.xlu1 %566  ;;  %v591_v33 = vpop.permute.xlu0 %590  ;;  %v756_v38 = vsel %vm755_vm5, %v733_v25, 0  ;;  %v769_v39 = vsel %vm755_vm5, %v740_v28, 0 }
 0x17a   :  { %v687_v40 = vrot.slane %v567_v32, %v2763_v18  ;;  %v719_v41 = vrot.slane %v591_v33, %v2763_v18  ;;  %v758_v27 = vshrl.u32 %v756_v38, 16  ;;  %v771_v42 = vshrl.u32 %v769_v39, 16 }
 0x17b   :  { %v757_v45 = vand.u32 65535, %v756_v38  ;;  %v770_v57 = vand.u32 65535, %v769_v39  ;;  %v819_v38 = vrot.slane %v2518_v15, %v2530_v20 }
 0x17c   :  { %v760_v46 = vcvt.s32.f32 %v758_v27  ;;  %v773_v47 = vcvt.s32.f32 %v771_v42  ;;  %v747_v48 = vsel %vm732_vm1, %v687_v40, %v746_v43  ;;  %v754_v49 = vsel %vm732_vm1, %v719_v41, %v753_v44 }
 0x17d   :  { %v782_v29 = vsel %vm755_vm5, %v747_v48, 0  ;;  %v795_v50 = vsel %vm755_vm5, %v754_v49, 0  ;;  %v759_v52 = vcvt.s32.f32 %v757_v45  ;;  %v772_v58 = vcvt.s32.f32 %v770_v57 }
 0x17e   :  { %763 = vadd.xlane.f32.xlu1 %v760_v46  ;;  %776 = vadd.xlane.f32.xlu0 %v773_v47  ;;  %v784_v51 = vshrl.u32 %v782_v29, 16  ;;  %v783_v54 = vand.u32 65535, %v782_v29  ;;  %v797_v55 = vshrl.u32 %v795_v50, 16  ;;  %v796_v59 = vand.u32 65535, %v795_v50 }
 0x17f   :  { %v823_v44 = vrot.slane %v2518_v15, %v2537_v23 }
 0x180   :  { %v786_v53 = vcvt.s32.f32 %v784_v51  ;;  %v785_v31 = vcvt.s32.f32 %v783_v54  ;;  %v799_v56 = vcvt.s32.f32 %v797_v55  ;;  %v798_v60 = vcvt.s32.f32 %v796_v59 }
 0x182   :  { %761 = vadd.xlane.f32.xlu1 %v759_v52  ;;  %789 = vadd.xlane.f32.xlu0 %v786_v53 }
 0x186   :  { %787 = vadd.xlane.f32.xlu1 %v785_v31  ;;  %802 = vadd.xlane.f32.xlu0 %v799_v56 }
 0x18a   :  { %774 = vadd.xlane.f32.xlu0 %v772_v58 }
 0x18e   :  { %800 = vadd.xlane.f32.xlu0 %v798_v60 }
 0x207   :  { %v764_v61 = vpop.xlane.xlu1 %763  ;;  %v777_v62 = vpop.xlane.xlu0 %776 }
 0x208   :  { %v766_v63 = vcvt.f32.s32 %v764_v61  ;;  %v779_v9 = vcvt.f32.s32 %v777_v62 }
 0x20a   :  { %v767_v4 = vshll.u32 %v766_v63, 16  ;;  %v780_v22 = vshll.u32 %v779_v9, 16 }
 0x20b   :  { %v762_v1 = vpop.xlane.xlu1 %761  ;;  %v790_v2 = vpop.xlane.xlu0 %789 }
 0x20c   :  { %v765_v5 = vcvt.f32.s32 %v762_v1  ;;  %v792_v6 = vcvt.f32.s32 %v790_v2 }
 0x20e   :  { %v2841_v8 = vadd.s32 %v767_v4, %v765_v5  ;;  %v793_v11 = vshll.u32 %v792_v6, 16 }
 0x20f   :  { %v788_v10 = vpop.xlane.xlu1 %787  ;;  %v803_v0 = vpop.xlane.xlu0 %802 }
 0x210   :  { %v791_v12 = vcvt.f32.s32 %v788_v10  ;;  %vm824_vm6 = vcmp.eq.s32.totalorder %v2841_v8, %v811_v3  ;;  %vm825_vm8 = vcmp.eq.s32.totalorder %v2841_v8, %v815_v7  ;;  %v805_v26 = vcvt.f32.s32 %v803_v0 }
 0x211   :  { %v2238_v21 = vsel %vm824_vm6, 1.0, %v3514_v13  ;;  %v2239_v14 = vsel %vm825_vm8, 1.0, %v3514_v13 }
 0x212   :  { %v794_v24 = vadd.s32 %v793_v11, %v791_v12  ;;  %v2277_v19 = vpack.i.bf16 %v2239_v14, %v2238_v21  ;;  %v806_v39 = vshll.u32 %v805_v26, 16  ;;  %v873_v31 = vmul.f32 %v2239_v14, %v2559_v35 }
 0x213   :  { %v775_v17 = vpop.xlane.xlu0 %774  ;;  %v872_v58 = vmul.f32 %v2238_v21, %v2559_v35 }
 0x214   :  { %v778_v25 = vcvt.f32.s32 %v775_v17  ;;  %2278 = vperm.xlu1 %2276, %v2277_v19   ;;  %vm832_vm7 = vcmp.eq.s32.totalorder %v794_v24, %v811_v3  ;;  %vm833_vm9 = vcmp.eq.s32.totalorder %v794_v24, %v815_v7  ;;  %vm834_vm3 = vcmp.eq.s32.totalorder %v794_v24, %v819_v38 }
 0x215   :  { %v2246_v28 = vsel %vm832_vm7, 1.0, %v3514_v13  ;;  %v2247_v30 = vsel %vm833_vm9, 1.0, %v3514_v13  ;;  %v2248_v20 = vsel %vm834_vm3, 1.0, %v3514_v13  ;;  %vm835_vm8 = vcmp.eq.s32.totalorder %v794_v24, %v823_v44 }
 0x216   :  { %v781_v16 = vadd.s32 %v780_v22, %v778_v25  ;;  %v2287_v32 = vpack.i.bf16 %v2247_v30, %v2246_v28  ;;  %vm826_vm7 = vcmp.eq.s32.totalorder %v2841_v8, %v819_v38  ;;  %v2249_v50 = vsel %vm835_vm8, 1.0, %v3514_v13 }
 0x217   :  { %v801_v33 = vpop.xlane.xlu0 %800  ;;  %v2240_v51 = vsel %vm826_vm7, 1.0, %v3514_v13  ;;  %v881_v59 = vmul.f32 %v2247_v30, %v2557_v34  ;;  %v880_v62 = vmul.f32 %v2246_v28, %v2557_v34  ;;  %v882_v5 = vmul.f32 %v2248_v20, %v2557_v34  ;;  %v2897_v28 = vld [vmem:[#allocation3] sm:$0xff] }
 0x218   :  { %v804_v40 = vcvt.f32.s32 %v801_v33  ;;  %2288 = vperm.xlu1 %2276, %v2287_v32   ;;  %vm828_vm11 = vcmp.eq.s32.totalorder %v781_v16, %v811_v3  ;;  %vm829_vm10 = vcmp.eq.s32.totalorder %v781_v16, %v815_v7  ;;  %vm830_vm14 = vcmp.eq.s32.totalorder %v781_v16, %v819_v38 }
 0x219   :  { %v2242_v41 = vsel %vm828_vm11, 1.0, %v3514_v13  ;;  %v2243_v27 = vsel %vm829_vm10, 1.0, %v3514_v13  ;;  %v2244_v29 = vsel %vm830_vm14, 1.0, %v3514_v13  ;;  %vm831_vm9 = vcmp.eq.s32.totalorder %v781_v16, %v823_v44 }
 0x21a   :  { %v807_v42 = vadd.s32 %v806_v39, %v804_v40  ;;  %v2282_v43 = vpack.i.bf16 %v2243_v27, %v2242_v41  ;;  %v2297_v53 = vpack.i.bf16 %v2244_v29, %v2240_v51  ;;  %vm827_vm11 = vcmp.eq.s32.totalorder %v2841_v8, %v823_v44  ;;  %v73_v40 = vld [vmem:[#allocation3 + $0x18] sm:$0xff] }
 0x21b   :  { %v2245_v54 = vsel %vm831_vm9, 1.0, %v3514_v13  ;;  %v2241_v55 = vsel %vm827_vm11, 1.0, %v3514_v13  ;;  %v877_v57 = vmul.f32 %v2243_v27, %v2563_v37  ;;  %v876_v60 = vmul.f32 %v2242_v41, %v2563_v37 }
 0x21c   :  { %2283 = vperm.xlu0 %2275, %v2282_v43   ;;  %vm838_vm15 = vcmp.eq.s32.totalorder %v807_v42, %v819_v38  ;;  %vm836_vm2 = vcmp.eq.s32.totalorder %v807_v42, %v811_v3  ;;  %vm837_vm1 = vcmp.eq.s32.totalorder %v807_v42, %v815_v7  ;;  %vm839_vm6 = vcmp.eq.s32.totalorder %v807_v42, %v823_v44 }
 0x21d   :  { %v2252_v45 = vsel %vm838_vm15, 1.0, %v3514_v13  ;;  %v2250_v46 = vsel %vm836_vm2, 1.0, %v3514_v13  ;;  %v2251_v47 = vsel %vm837_vm1, 1.0, %v3514_v13  ;;  %v2253_v23 = vsel %vm839_vm6, 1.0, %v3514_v13 }
 0x21e   :  { %v2302_v48 = vpack.i.bf16 %v2252_v45, %v2248_v20  ;;  %v2292_v49 = vpack.i.bf16 %v2251_v47, %v2250_v46  ;;  %v2312_v52 = vpack.i.bf16 %v2253_v23, %v2249_v50  ;;  %v2307_v56 = vpack.i.bf16 %v2245_v54, %v2241_v55 }
 0x21f   :  { %v885_v61 = vmul.f32 %v2251_v47, %v2561_v36  ;;  %v878_v63 = vmul.f32 %v2244_v29, %v2563_v37  ;;  %v884_v1 = vmul.f32 %v2250_v46, %v2561_v36  ;;  %v886_v2 = vmul.f32 %v2252_v45, %v2561_v36 }
 0x220   :  { %2303 = vperm.xlu0 %2275, %v2302_v48   ;;  %2293 = vperm.xlu1 %2276, %v2292_v49   ;;  %v874_v3 = vmul.f32 %v2240_v51, %v2559_v35  ;;  %v879_v4 = vmul.f32 %v2245_v54, %v2563_v37  ;;  %v887_v6 = vmul.f32 %v2253_v23, %v2561_v36  ;;  %v72_v36 = vld [vmem:[#allocation3 + $0x10] sm:$0xff]  ;;  %v2936_v49 = vld [vmem:[#allocation3 + $0x8] sm:$0xff]  ;;  %vm1032_vm10 = vcmask 60416  }
 0x221   :  { %v875_v7 = vmul.f32 %v2241_v55, %v2559_v35  ;;  %v883_v8 = vmul.f32 %v2249_v50, %v2557_v34  ;;  %v2891_v35 = vld [vmem:[#allocation6] sm:$0xff]  ;;  %vm1902_vm3 = vcmask 523264   ;;  %vm1904_vm14 = vcmask 785408  }
 0x224   :  { %2313 = vperm.xlu0 %2275, %v2312_v52   ;;  %2298 = vperm.xlu1 %2276, %v2297_v53  }
 0x228   :  { %908 = vperm.xlu0 %2275, %v873_v31   ;;  %2308 = vperm.xlu1 %2276, %v2307_v56   ;;  %v75_v56 = vld [vmem:[#allocation6 + $0x8] sm:$0xff] }
 0x22c   :  { %920 = vperm.xlu0 %2275, %v877_v57   ;;  %905 = vperm.xlu1 %2276, %v872_v58  }
 0x230   :  { %932 = vperm.xlu0 %2275, %v881_v59   ;;  %917 = vperm.xlu1 %2276, %v876_v60  }
 0x234   :  { %944 = vperm.xlu0 %2275, %v885_v61   ;;  %929 = vperm.xlu1 %2276, %v880_v62  }
 0x238   :  { %923 = vperm.xlu0 %2275, %v878_v63   ;;  %941 = vperm.xlu1 %2276, %v884_v1  }
 0x23c   :  { %947 = vperm.xlu0 %2275, %v886_v2   ;;  %911 = vperm.xlu1 %2276, %v874_v3  }
 0x240   :  { %926 = vperm.xlu0 %2275, %v879_v4   ;;  %935 = vperm.xlu1 %2276, %v882_v5  }
 0x244   :  { %950 = vperm.xlu0 %2275, %v887_v6   ;;  %914 = vperm.xlu1 %2276, %v875_v7  }
 0x248   :  { %938 = vperm.xlu1 %2276, %v883_v8  }
 0x28f   :  { %v2279_v9 = vpop.permute.xlu1 %2278 }
 0x290   :  { %v2887_v24 = vunpack.i.h.bf16 %v2279_v9  ;;  %v2889_v19 = vunpack.i.l.bf16 %v2279_v9 }
 0x292   :  { %v1466_v25 = vrot.slane %v2887_v24, %v2763_v18  ;;  %v1604_v30 = vmul.f32 %v2887_v24, %v2891_v35  ;;  %v1462_v16 = vrot.slane %v2889_v19, %v2763_v18  ;;  %v1603_v32 = vmul.f32 %v2889_v19, %v2891_v35 }
 0x293   :  { %v2289_v10 = vpop.permute.xlu1 %2288  ;;  %v2925_v20 = vmul.f32 %v2887_v24, %v2897_v28  ;;  %v2929_v45 = vmul.f32 %v2889_v19, %v2897_v28 }
 0x294   :  { %v2883_v37 = vunpack.i.h.bf16 %v2289_v10  ;;  %v2885_v14 = vunpack.i.l.bf16 %v2289_v10  ;;  %v1523_v48 = vsel %vm720_vm4, %v1466_v25, %v1462_v16  ;;  %v2944_v51 = vsel %vm755_vm5, %v1603_v32, 0.0 }
 0x295   :  { %v2947_v52 = vsel %vm755_vm5, %v1604_v30, 0.0 }
 0x296   :  { %v1340_v34 = vmul.f32 %v2883_v37, %v72_v36  ;;  %v1339_v22 = vmul.f32 %v2885_v14, %v72_v36  ;;  %v1498_v38 = vrot.slane %v2883_v37, %v2763_v18  ;;  %v1494_v39 = vrot.slane %v2885_v14, %v2763_v18 }
 0x297   :  { %v2284_v0 = vpop.permute.xlu0 %2283 }
 0x298   :  { %v2914_v27 = vsel %vm755_vm5, %v1340_v34, 0.0  ;;  %v2917_v42 = vsel %vm755_vm5, %v1339_v22, 0.0  ;;  %v2931_v46 = vunpack.i.h.bf16 %v2284_v0  ;;  %v2933_v47 = vunpack.i.l.bf16 %v2284_v0 }
 0x299   :  { %v1411_v53 = vrot.slane %v2914_v27, 4  ;;  %v1404_v54 = vrot.slane %v2917_v42, 4  ;;  %v2952_v55 = vsel %vm720_vm4, %v1498_v38, %v1494_v39 }
 0x29a   :  { %v2963_v61 = vmul.f32 %v2931_v46, %v2936_v49  ;;  %v1482_v62 = vrot.slane %v2931_v46, %v2763_v18  ;;  %v1478_v63 = vrot.slane %v2933_v47, %v2763_v18  ;;  %v2981_v6 = vmul.f32 %v2931_v46, %v75_v56 }
 0x29b   :  { %v2294_v11 = vpop.permute.xlu1 %2293  ;;  %v2304_v12 = vpop.permute.xlu0 %2303  ;;  %v2985_v7 = vmul.f32 %v2933_v47, %v2936_v49  ;;  %v2988_v8 = vmul.f32 %v2933_v47, %v75_v56 }
 0x29c   :  { %v2905_v33 = vunpack.i.h.bf16 %v2294_v11  ;;  %v2911_v41 = vunpack.i.l.bf16 %v2294_v11  ;;  %v2919_v43 = vunpack.i.h.bf16 %v2304_v12  ;;  %v2921_v44 = vunpack.i.l.bf16 %v2304_v12 }
 0x29d   :  { %v1526_v22 = vsel %vm720_vm4, %v1482_v62, %v1478_v63 }
 0x29e   :  { %v1344_v23 = vmul.f32 %v2905_v33, %v73_v40  ;;  %v1343_v31 = vmul.f32 %v2911_v41, %v73_v40  ;;  %v1345_v57 = vmul.f32 %v2919_v43, %v73_v40  ;;  %v1341_v58 = vmul.f32 %v2921_v44, %v72_v36 }
 0x29f   :  { %v2299_v21 = vpop.permute.xlu1 %2298  ;;  %v2314_v17 = vpop.permute.xlu0 %2313  ;;  %v1514_v3 = vrot.slane %v2905_v33, %v2763_v18  ;;  %v1510_v4 = vrot.slane %v2911_v41, %v2763_v18 }
 0x2a0   :  { %v2957_v59 = vunpack.i.h.bf16 %v2314_v17  ;;  %v2959_v60 = vunpack.i.l.bf16 %v2314_v17  ;;  %v2969_v1 = vunpack.i.h.bf16 %v2299_v21  ;;  %v2972_v2 = vsel %vm755_vm5, %v1344_v23, 0.0 }
 0x2a1   :  { %v2978_v5 = vunpack.i.l.bf16 %v2299_v21  ;;  %v1431_v9 = vsel %vm755_vm5, %v1343_v31, 0.0  ;;  %v2992_v10 = vsel %vm755_vm5, %v1345_v57, 0.0  ;;  %v2995_v0 = vsel %vm755_vm5, %v1341_v58, 0.0 }
 0x2a2   :  { %3524 = vst [vmem:[#allocation17_spill] sm:$0xff] %v2957_v59  ;;  %3525 = vst [vmem:[#allocation18_spill] sm:$0xff] %v2959_v60  ;;  %v1346_v11 = vmul.f32 %v2957_v59, %v73_v40  ;;  %v1342_v12 = vmul.f32 %v2959_v60, %v72_v36  ;;  %v1486_v25 = vrot.slane %v2969_v1, %v2763_v18  ;;  %v1432_v16 = vrot.slane %v1431_v9, 4 }
 0x2a3   :  { %v2309_v26 = vpop.permute.xlu1 %2308  ;;  %v2939_v29 = vpop.permute.xlu0 %908  ;;  %3526 = vst [vmem:[#allocation19_spill] sm:$0xff] %v2969_v1  ;;  %v3006_v32 = vsel %vm720_vm4, %v1514_v3, %v1510_v4  ;;  %v1470_v38 = vrot.slane %v2978_v5, %v2763_v18  ;;  %v1502_v31 = vrot.slane %v2921_v44, %v2763_v18  ;;  %v3020_v57 = vmul.f32 %v2969_v1, %v2936_v49 }
 0x2a4   :  { %v3003_v30 = vunpack.i.h.bf16 %v2309_v26  ;;  %v3010_v39 = vunpack.i.l.bf16 %v2309_v26  ;;  %v3023_v58 = vmul.f32 %v2969_v1, %v75_v56  ;;  %v3026_v26 = vsel %vm755_vm5, %v1346_v11, 0.0 }
 0x2a5   :  { %v3029_v62 = vsel %vm755_vm5, %v1342_v12, 0.0  ;;  %v3033_v63 = vmul.f32 %v2978_v5, %v2897_v28  ;;  %v1527_v3 = vsel %vm722_vm13, %v1486_v25, %v1526_v22  ;;  %v3038_v4 = vmul.f32 %v2978_v5, %v2891_v35 }
 0x2a6   :  { %3527 = vst [vmem:[#allocation20_spill] sm:$0xff] %v3003_v30  ;;  %3528 = vst [vmem:[#allocation21_spill] sm:$0xff] %v3010_v39  ;;  %v1490_v13 = vrot.slane %v3003_v30, %v2763_v18  ;;  %v1524_v36 = vsel %vm722_vm13, %v1470_v38, %v1523_v48  ;;  %v1522_v11 = vrot.slane %v2957_v59, %v2763_v18 }
 0x2a7   :  { %v2941_v50 = vpop.permute.xlu1 %905  ;;  %v921_v21 = vpop.permute.xlu0 %920  ;;  %v1474_v12 = vrot.slane %v3010_v39, %v2763_v18  ;;  %v1412_v23 = vadd.f32 %v1411_v53, %v2914_v27  ;;  %v1506_v1 = vrot.slane %v2959_v60, %v2763_v18  ;;  %v1405_v48 = vadd.f32 %v1404_v54, %v2917_v42 }
 0x2a8   :  { %v3055_v38 = vmul.f32 %v3003_v30, %v2936_v49  ;;  %v3058_v59 = vmul.f32 %v3003_v30, %v75_v56  ;;  %v3062_v27 = vmul.f32 %v3010_v39, %v2897_v28  ;;  %v3065_v22 = vsel %vm724_vm12, %v1490_v13, %v1527_v3 }
 0x2a9   :  { %v1413_v53 = vrot.slane %v1412_v23, 2  ;;  %v3069_v25 = vmul.f32 %v3010_v39, %v2891_v35  ;;  %v955_v42 = vrot.slane %v2941_v50, %v2763_v18  ;;  %v1406_v49 = vrot.slane %v1405_v48, 2 }
 0x2aa   :  { %v3074_v54 = vsel %vm724_vm12, %v1474_v12, %v1524_v36  ;;  %v1620_v28 = vrot.slane %v2944_v51, 4  ;;  %v959_v13 = vrot.slane %v2939_v29, %v2763_v18  ;;  %v975_v3 = vrot.slane %v921_v21, %v2763_v18 }
 0x2ab   :  { %v918_v34 = vpop.permute.xlu1 %917  ;;  %v933_v17 = vpop.permute.xlu0 %932  ;;  %v1414_v56 = vadd.f32 %v1413_v53, %v1412_v23  ;;  %v1407_v60 = vadd.f32 %v1406_v49, %v1405_v48  ;;  %v1433_v35 = vadd.f32 %v1432_v16, %v1431_v9  ;;  %v1530_v50 = vsel %vm722_vm13, %v1502_v31, %v2952_v55 }
 0x2ac   :  { %v971_v30 = vrot.slane %v918_v34, %v2763_v18  ;;  %v1621_v15 = vadd.f32 %v1620_v28, %v2944_v51  ;;  %v3086_v34 = vsel %vm720_vm4, %v959_v13, %v955_v42  ;;  %v3089_v53 = vsel %vm724_vm12, %v1506_v1, %v1530_v50 }
 0x2ad   :  { %v1415_v39 = vrot.slane %v1414_v56, 1  ;;  %v1408_v29 = vrot.slane %v1407_v60, 1  ;;  %v1434_v21 = vrot.slane %v1433_v35, 2  ;;  %v991_v55 = vrot.slane %v933_v17, %v2763_v18 }
 0x2ae   :  { %v3092_v9 = vsel %vm720_vm4, %v975_v3, %v971_v30  ;;  %v1622_v16 = vrot.slane %v1621_v15, 2  ;;  %v1647_v42 = vsel %vm755_vm5, %v2988_v8, 0.0  ;;  %v3530_v13 = vrot.slane %v2972_v2, 4 }
 0x2af   :  { %v930_v40 = vpop.permute.xlu1 %929  ;;  %v945_v23 = vpop.permute.xlu0 %944  ;;  %v1416_v48 = vadd.f32 %v1415_v39, %v1414_v56  ;;  %v1409_v51 = vadd.f32 %v1408_v29, %v1407_v60  ;;  %v1435_v31 = vadd.f32 %v1434_v21, %v1433_v35  ;;  %v1648_v39 = vrot.slane %v1647_v42, 4 }
 0x2b0   :  { %v987_v36 = vrot.slane %v930_v40, %v2763_v18  ;;  %v1007_v40 = vrot.slane %v945_v23, %v2763_v18  ;;  %v1623_v1 = vadd.f32 %v1622_v16, %v1621_v15  ;;  %v3529_v60 = vrot.slane %v2919_v43, %v2763_v18 }
 0x2b1   :  { %v1548_v49 = vmul.f32 %v3089_v53, %v1416_v48  ;;  %v1547_v30 = vmul.f32 %v3089_v53, %v1409_v51  ;;  %v1436_v56 = vrot.slane %v1435_v31, 1  ;;  %v1440_v8 = vadd.f32 %v3530_v13, %v2972_v2 }
 0x2b2   :  { %v3100_v28 = vsel %vm720_vm4, %v991_v55, %v987_v36  ;;  %v1533_v17 = vsel %vm722_vm13, %v3529_v60, %v3006_v32  ;;  %v1624_v15 = vrot.slane %v1623_v1, 1  ;;  %v1649_v35 = vadd.f32 %v1648_v39, %v1647_v42 }
 0x2b3   :  { %v942_v12 = vpop.permute.xlu1 %941  ;;  %v1582_v3 = vsel %vm1032_vm10, %v1548_v49, 0.0  ;;  %v3531_v50 = vrot.slane %v2995_v0, 4  ;;  %v1579_v29 = vsel %vm1032_vm10, %v1547_v30, 0.0  ;;  %v1437_v21 = vadd.f32 %v1436_v56, %v1435_v31  ;;  %v3122_v51 = vpop.permute.xlu0 %923 }
 0x2b4   :  { %1583 = vadd.xlane.f32.xlu0 %v1582_v3  ;;  %v3119_v32 = vsel %vm724_vm12, %v1522_v11, %v1533_v17  ;;  %v1441_v48 = vrot.slane %v1440_v8, 2  ;;  %1580 = vadd.xlane.f32.xlu1 %v1579_v29  ;;  %v1625_v2 = vadd.f32 %v1624_v15, %v1623_v1  ;;  %v1650_v55 = vrot.slane %v1649_v35, 2 }
 0x2b5   :  { %v1419_v36 = vadd.f32 %v3531_v50, %v2995_v0  ;;  %v1003_v16 = vrot.slane %v942_v12, %v2763_v18  ;;  %v1551_v0 = vmul.f32 %v3119_v32, %v1437_v21  ;;  %v1627_v39 = vrot.slane %v2947_v52, 4 }
 0x2b6   :  { %v1442_v49 = vadd.f32 %v1441_v48, %v1440_v8  ;;  %v1633_v31 = vsel %vm755_vm5, %v3038_v4, 0.0  ;;  %v1731_v11 = vmul.f32 %v1625_v2, %v3074_v54  ;;  %v1651_v30 = vadd.f32 %v1650_v55, %v1649_v35 }
 0x2b7   :  { %v3115_v23 = vpop.permute.xlu1 %911  ;;  %v1420_v42 = vrot.slane %v1419_v36, 2  ;;  %v1634_v60 = vrot.slane %v1633_v31, 4  ;;  %v1591_v1 = vsel %vm1032_vm10, %v1551_v0, 0.0  ;;  %v979_v12 = vrot.slane %v3122_v51, %v2763_v18 }
 0x2b8   :  { %v1443_v17 = vrot.slane %v1442_v49, 1  ;;  %v1628_v13 = vadd.f32 %v1627_v39, %v2947_v52  ;;  %v1747_v8 = vsel %vm1032_vm10, %v1731_v11, 0.0  ;;  %1592 = vadd.xlane.f32.xlu0 %v1591_v1  ;;  %v1652_v3 = vrot.slane %v1651_v30, 1  ;;  %v3141_v52 = vpop.permute.xlu0 %947 }
 0x2b9   :  { %v1421_v56 = vadd.f32 %v1420_v42, %v1419_v36  ;;  %v1635_v50 = vadd.f32 %v1634_v60, %v1633_v31  ;;  %1748 = vadd.xlane.f32.xlu1 %v1747_v8  ;;  %v3137_v35 = vsel %vm720_vm4, %v1007_v40, %v1003_v16  ;;  %v1654_v21 = vsel %vm755_vm5, %v2981_v6, 0.0 }
 0x2ba   :  { %v1444_v36 = vadd.f32 %v1443_v17, %v1442_v49  ;;  %v1629_v29 = vrot.slane %v1628_v13, 2  ;;  %v1653_v48 = vadd.f32 %v1652_v3, %v1651_v30  ;;  %v1655_v42 = vrot.slane %v1654_v21, 4 }
 0x2bb   :  { %v1422_v15 = vrot.slane %v1421_v56, 1  ;;  %v3134_v4 = vpop.permute.xlu1 %935  ;;  %v1636_v55 = vrot.slane %v1635_v50, 2  ;;  %v963_v39 = vrot.slane %v3115_v23, %v2763_v18  ;;  %v3532_v40 = vrot.slane %v3029_v62, 4 }
 0x2bc   :  { %v1552_v0 = vmul.f32 %v3119_v32, %v1444_v36  ;;  %v1630_v31 = vadd.f32 %v1629_v29, %v1628_v13  ;;  %v1735_v49 = vmul.f32 %v1653_v48, %v3065_v22  ;;  %v1656_v30 = vadd.f32 %v1655_v42, %v1654_v21 }
 0x2bd   :  { %v1423_v2 = vadd.f32 %v1422_v15, %v1421_v56  ;;  %v1426_v16 = vadd.f32 %v3532_v40, %v3029_v62  ;;  %v1637_v11 = vadd.f32 %v1636_v55, %v1635_v50  ;;  %v1011_v60 = vrot.slane %v3141_v52, %v2763_v18 }
 0x2be   :  { %v1594_v56 = vsel %vm1032_vm10, %v1552_v0, 0.0  ;;  %v1631_v1 = vrot.slane %v1630_v31, 1  ;;  %v1759_v23 = vsel %vm1032_vm10, %v1735_v49, 0.0  ;;  %v995_v62 = vrot.slane %v3134_v4, %v2763_v18  ;;  %v3164_v4 = vpop.permute.xlu0 %926 }
 0x2bf   :  { %v1549_v6 = vmul.f32 %v3089_v53, %v1423_v2  ;;  %v1427_v17 = vrot.slane %v1426_v16, 2  ;;  %1595 = vadd.xlane.f32.xlu0 %v1594_v56  ;;  %v1638_v13 = vrot.slane %v1637_v11, 1  ;;  %v1657_v8 = vrot.slane %v1656_v30, 2  ;;  %v915_v3 = vpop.permute.xlu1 %914  ;;  %1760 = vadd.xlane.f32.xlu1 %v1759_v23 }
 0x2c0   :  { %v1632_v15 = vadd.f32 %v1631_v1, %v1630_v31  ;;  %v3533_v36 = vrot.slane %v2992_v10, 4  ;;  %v1640_v21 = vsel %vm755_vm5, %v3069_v25, 0.0  ;;  %v1661_v31 = vsel %vm755_vm5, %v3023_v58, 0.0 }
 0x2c1   :  { %v1428_v50 = vadd.f32 %v1427_v17, %v1426_v16  ;;  %v1585_v48 = vsel %vm1032_vm10, %v1549_v6, 0.0  ;;  %v1639_v2 = vadd.f32 %v1638_v13, %v1637_v11  ;;  %v1658_v55 = vadd.f32 %v1657_v8, %v1656_v30 }
 0x2c2   :  { %v1447_v29 = vadd.f32 %v3533_v36, %v2992_v10  ;;  %v1641_v42 = vrot.slane %v1640_v21, 4  ;;  %v1732_v0 = vmul.f32 %v1632_v15, %v3074_v54  ;;  %v1662_v1 = vrot.slane %v1661_v31, 4 }
 0x2c3   :  { %v1429_v40 = vrot.slane %v1428_v50, 1  ;;  %v1733_v16 = vmul.f32 %v1639_v2, %v3074_v54  ;;  %v1659_v10 = vrot.slane %v1658_v55, 1  ;;  %1586 = vadd.xlane.f32.xlu1 %v1585_v48  ;;  %v967_v11 = vrot.slane %v915_v3, %v2763_v18  ;;  %v939_v8 = vpop.permute.xlu1 %938 }
 0x2c4   :  { %v1448_v49 = vrot.slane %v1447_v29, 2  ;;  %v1642_v56 = vadd.f32 %v1641_v42, %v1640_v21  ;;  %v1750_v25 = vsel %vm1032_vm10, %v1732_v0, 0.0  ;;  %v983_v17 = vrot.slane %v3164_v4, %v2763_v18 }
 0x2c5   :  { %v1430_v6 = vadd.f32 %v1429_v40, %v1428_v50  ;;  %1751 = vadd.xlane.f32.xlu0 %v1750_v25  ;;  %v1660_v23 = vadd.f32 %v1659_v10, %v1658_v55  ;;  %v1663_v58 = vadd.f32 %v1662_v1, %v1661_v31  ;;  %v1017_v21 = vsel %vm722_vm13, %v963_v39, %v3086_v34  ;;  %v3185_v39 = vpop.permute.xlu0 %950 }
 0x2c6   :  { %v1449_v30 = vadd.f32 %v1448_v49, %v1447_v29  ;;  %v1643_v13 = vrot.slane %v1642_v56, 2  ;;  %v3534_v50 = vrot.slane %v3026_v26, 4  ;;  %v1753_v3 = vsel %vm1032_vm10, %v1733_v16, 0.0 }
 0x2c7   :  { %v1550_v15 = vmul.f32 %v3089_v53, %v1430_v6  ;;  %v1736_v29 = vmul.f32 %v1660_v23, %v3065_v22  ;;  %v1664_v42 = vrot.slane %v1663_v58, 2  ;;  %1754 = vadd.xlane.f32.xlu1 %v1753_v3  ;;  %v999_v0 = vrot.slane %v939_v8, %v2763_v18 }
 0x2c8   :  { %v1450_v36 = vrot.slane %v1449_v30, 1  ;;  %v1454_v48 = vadd.f32 %v3534_v50, %v3026_v26  ;;  %v1644_v2 = vadd.f32 %v1643_v13, %v1642_v56  ;;  %v1018_v53 = vsel %vm724_vm12, %v967_v11, %v1017_v21 }
 0x2c9   :  { %v1762_v49 = vsel %vm1032_vm10, %v1736_v29, 0.0  ;;  %v1588_v34 = vsel %vm1032_vm10, %v1550_v15, 0.0  ;;  %v1665_v31 = vadd.f32 %v1664_v42, %v1663_v58  ;;  %v1023_v56 = vsel %vm722_vm13, %v995_v62, %v3100_v28 }
 0x2ca   :  { %v1451_v55 = vadd.f32 %v1450_v36, %v1449_v30  ;;  %v1455_v40 = vrot.slane %v1454_v48, 2  ;;  %v1645_v26 = vrot.slane %v1644_v2, 1  ;;  %1763 = vadd.xlane.f32.xlu0 %v1762_v49  ;;  %v1668_v1 = vsel %vm755_vm5, %v3058_v59, 0.0 }
 0x2cb   :  { %v1666_v6 = vrot.slane %v1665_v31, 1  ;;  %v1669_v11 = vrot.slane %v1668_v1, 4  ;;  %v1347_v30 = vsel %vm755_vm5, %v2929_v45, 0.0  ;;  %1589 = vadd.xlane.f32.xlu1 %v1588_v34  ;;  %v1015_v23 = vrot.slane %v3185_v39, %v2763_v18 }
 0x2cc   :  { %v1553_v16 = vmul.f32 %v3119_v32, %v1451_v55  ;;  %v1456_v10 = vadd.f32 %v1455_v40, %v1454_v48  ;;  %v1646_v25 = vadd.f32 %v1645_v26, %v1644_v2  ;;  %v1024_v8 = vsel %vm724_vm12, %v999_v0, %v1023_v56 }
 0x2cd   :  { %v1348_v58 = vrot.slane %v1347_v30, 4  ;;  %v1667_v62 = vadd.f32 %v1666_v6, %v1665_v31  ;;  %v1670_v59 = vadd.f32 %v1669_v11, %v1668_v1  ;;  %v1033_v36 = vsel %vm1032_vm10, %v1018_v53, 0.0 }
 0x2ce   :  { %v1457_v13 = vrot.slane %v1456_v10, 1  ;;  %v1597_v15 = vsel %vm1032_vm10, %v1553_v16, 0.0  ;;  %v1734_v28 = vmul.f32 %v1646_v25, %v3074_v54  ;;  %v1375_v45 = vsel %vm755_vm5, %v2985_v7, 0.0 }
 0x2cf   :  { %1598 = vadd.xlane.f32.xlu0 %v1597_v15  ;;  %v1349_v50 = vadd.f32 %v1348_v58, %v1347_v30  ;;  %v1737_v3 = vmul.f32 %v1667_v62, %v3065_v22  ;;  %v1671_v29 = vrot.slane %v1670_v59, 2  ;;  %v1376_v2 = vrot.slane %v1375_v45, 4 }
 0x2d0   :  { %v1458_v21 = vadd.f32 %v1457_v13, %v1456_v10  ;;  %v1756_v48 = vsel %vm1032_vm10, %v1734_v28, 0.0  ;;  %v1039_v55 = vsel %vm1032_vm10, %v1024_v8, 0.0  ;;  %v1361_v53 = vsel %vm755_vm5, %v3033_v63, 0.0 }
 0x2d1   :  { %1757 = vadd.xlane.f32.xlu1 %v1756_v48  ;;  %v1350_v0 = vrot.slane %v1349_v50, 2  ;;  %v1765_v40 = vsel %vm1032_vm10, %v1737_v3, 0.0  ;;  %v1672_v49 = vadd.f32 %v1671_v29, %v1670_v59  ;;  %v1020_v7 = vsel %vm722_vm13, %v979_v12, %v3092_v9 }
 0x2d2   :  { %v1554_v42 = vmul.f32 %v3119_v32, %v1458_v21  ;;  %v1377_v34 = vadd.f32 %v1376_v2, %v1375_v45  ;;  %v1021_v31 = vsel %vm724_vm12, %v983_v17, %v1020_v7  ;;  %v1362_v63 = vrot.slane %v1361_v53, 4 }
 0x2d3   :  { %1766 = vadd.xlane.f32.xlu0 %v1765_v40  ;;  %v1351_v32 = vadd.f32 %v1350_v0, %v1349_v50  ;;  %v1673_v16 = vrot.slane %v1672_v49, 1  ;;  %v1354_v56 = vsel %vm755_vm5, %v2925_v20, 0.0  ;;  %v1368_v51 = vsel %vm755_vm5, %v3062_v27, 0.0 }
 0x2d4   :  { %v1600_v26 = vsel %vm1032_vm10, %v1554_v42, 0.0  ;;  %v1378_v10 = vrot.slane %v1377_v34, 2  ;;  %v1363_v12 = vadd.f32 %v1362_v63, %v1361_v53  ;;  %v1355_v1 = vrot.slane %v1354_v56, 4 }
 0x2d5   :  { %1034 = vadd.xlane.f32.xlu1 %v1033_v36  ;;  %v1352_v9 = vrot.slane %v1351_v32, 1  ;;  %v1369_v25 = vrot.slane %v1368_v51, 4  ;;  %v1674_v6 = vadd.f32 %v1673_v16, %v1672_v49  ;;  %v1382_v4 = vsel %vm755_vm5, %v2963_v61, 0.0 }
 0x2d6   :  { %v1379_v11 = vadd.f32 %v1378_v10, %v1377_v34  ;;  %v1389_v17 = vsel %vm755_vm5, %v3020_v57, 0.0  ;;  %v1364_v13 = vrot.slane %v1363_v12, 2  ;;  %v1356_v20 = vadd.f32 %v1355_v1, %v1354_v56 }
 0x2d7   :  { %1601 = vadd.xlane.f32.xlu0 %v1600_v26  ;;  %v1353_v30 = vadd.f32 %v1352_v9, %v1351_v32  ;;  %v1370_v8 = vadd.f32 %v1369_v25, %v1368_v51  ;;  %v1738_v27 = vmul.f32 %v1674_v6, %v3065_v22  ;;  %v1383_v15 = vrot.slane %v1382_v4, 4 }
 0x2d8   :  { %v1380_v58 = vrot.slane %v1379_v11, 1  ;;  %v1390_v28 = vrot.slane %v1389_v17, 4  ;;  %v1365_v59 = vadd.f32 %v1364_v13, %v1363_v12  ;;  %v1357_v36 = vrot.slane %v1356_v20, 2 }
 0x2d9   :  { %1040 = vadd.xlane.f32.xlu1 %v1039_v55  ;;  %v1539_v62 = vmul.f32 %v3074_v54, %v1353_v30  ;;  %v1371_v21 = vrot.slane %v1370_v8, 2  ;;  %v1768_v61 = vsel %vm1032_vm10, %v1738_v27, 0.0  ;;  %v1384_v57 = vadd.f32 %v1383_v15, %v1382_v4 }
 0x2da   :  { %v1381_v50 = vadd.f32 %v1380_v58, %v1379_v11  ;;  %v1391_v45 = vadd.f32 %v1390_v28, %v1389_v17  ;;  %v1366_v3 = vrot.slane %v1365_v59, 1  ;;  %v1358_v29 = vadd.f32 %v1357_v36, %v1356_v20  ;;  %v3258_v28 = vld [vmem:[#allocation8] sm:$0xff] }
 0x2db   :  { %1769 = vadd.xlane.f32.xlu0 %v1768_v61  ;;  %v1555_v48 = vsel %vm1032_vm10, %v1539_v62, 0.0  ;;  %v1372_v2 = vadd.f32 %v1371_v21, %v1370_v8  ;;  %v1385_v0 = vrot.slane %v1384_v57, 2  ;;  %v1396_v53 = vsel %vm755_vm5, %v3055_v38, 0.0  ;;  %v3268_v61 = vld [vmem:[#allocation8 + $0x10] sm:$0xff] }
 0x2dc   :  { %v1543_v42 = vmul.f32 %v3065_v22, %v1381_v50  ;;  %v1392_v55 = vrot.slane %v1391_v45, 2  ;;  %v1367_v40 = vadd.f32 %v1366_v3, %v1365_v59  ;;  %v1359_v49 = vrot.slane %v1358_v29, 1 }
 0x2dd   :  { %1556 = vadd.xlane.f32.xlu1 %v1555_v48  ;;  %v1373_v7 = vrot.slane %v1372_v2, 1  ;;  %v1397_v34 = vrot.slane %v1396_v53, 4  ;;  %v1036_v26 = vsel %vm1032_vm10, %v1021_v31, 0.0  ;;  %v1026_v32 = vsel %vm722_vm13, %v1011_v60, %v3137_v35 }
 0x2de   :  { %v1386_v63 = vadd.f32 %v1385_v0, %v1384_v57  ;;  %v1393_v16 = vadd.f32 %v1392_v55, %v1391_v45  ;;  %v1567_v10 = vsel %vm1032_vm10, %v1543_v42, 0.0  ;;  %v1027_v38 = vsel %vm724_vm12, %v1015_v23, %v1026_v32  ;;  %v3282_v0 = vld [vmem:[#allocation8 + $0x8] sm:$0xff] }
 0x2df   :  { %1037 = vadd.xlane.f32.xlu0 %v1036_v26  ;;  %v1398_v56 = vadd.f32 %v1397_v34, %v1396_v53  ;;  %v1541_v51 = vmul.f32 %v3074_v54, %v1367_v40  ;;  %v1360_v31 = vadd.f32 %v1359_v49, %v1358_v29  ;;  %v1374_v9 = vadd.f32 %v1373_v7, %v1372_v2 }
 0x2e0   :  { %v1387_v12 = vrot.slane %v1386_v63, 1  ;;  %v1042_v35 = vsel %vm1032_vm10, %v1027_v38, 0.0  ;;  %v1394_v25 = vrot.slane %v1393_v16, 1  ;;  %v1156_v62 = vmul.f32 %v3258_v28, %v2887_v24 }
 0x2e1   :  { %1568 = vadd.xlane.f32.xlu1 %v1567_v10  ;;  %v1399_v52 = vrot.slane %v1398_v56, 2  ;;  %v1540_v60 = vmul.f32 %v3074_v54, %v1360_v31  ;;  %v1561_v39 = vsel %vm1032_vm10, %v1541_v51, 0.0  ;;  %v1542_v23 = vmul.f32 %v3074_v54, %v1374_v9 }
 0x2e2   :  { %v1388_v1 = vadd.f32 %v1387_v12, %v1386_v63  ;;  %v1395_v17 = vadd.f32 %v1394_v25, %v1393_v16  ;;  %v1155_v21 = vmul.f32 %v3258_v28, %v2889_v19  ;;  %v1163_v50 = vmul.f32 %v3268_v61, %v2885_v14 }
 0x2e3   :  { %1043 = vadd.xlane.f32.xlu0 %v1042_v35  ;;  %v1400_v6 = vadd.f32 %v1399_v52, %v1398_v56  ;;  %v1558_v11 = vsel %vm1032_vm10, %v1540_v60, 0.0  ;;  %v1564_v13 = vsel %vm1032_vm10, %v1542_v23, 0.0  ;;  %v1178_v57 = vsel %vm89_vm0, %v1156_v62, 0.0  ;;  %v3298_v23 = vld [vmem:[#allocation8 + $0x18] sm:$0xff] }
 0x2e4   :  { %v1544_v4 = vmul.f32 %v3065_v22, %v1388_v1  ;;  %v1545_v8 = vmul.f32 %v3065_v22, %v1395_v17  ;;  %v1171_v24 = vsel %vm89_vm0, %v1155_v21, 0.0  ;;  %v1179_v29 = vrot.slane %v1178_v57, 4 }
 0x2e5   :  { %1562 = vadd.xlane.f32.xlu1 %v1561_v39  ;;  %v1401_v30 = vrot.slane %v1400_v6, 1  ;;  %v1227_v19 = vsel %vm89_vm0, %v1163_v50, 0.0  ;;  %v1172_v2 = vrot.slane %v1171_v24, 4  ;;  %v1159_v9 = vmul.f32 %v3282_v0, %v2933_v47 }
 0x2e6   :  { %v1570_v20 = vsel %vm1032_vm10, %v1544_v4, 0.0  ;;  %v1573_v58 = vsel %vm1032_vm10, %v1545_v8, 0.0  ;;  %v1228_v14 = vrot.slane %v1227_v19, 4  ;;  %v1180_v53 = vadd.f32 %v1179_v29, %v1178_v57 }
 0x2e7   :  { %1559 = vadd.xlane.f32.xlu0 %v1558_v11  ;;  %v1402_v27 = vadd.f32 %v1401_v30, %v1400_v6  ;;  %v1173_v49 = vadd.f32 %v1172_v2, %v1171_v24  ;;  %v1199_v39 = vsel %vm89_vm0, %v1159_v9, 0.0  ;;  %v1168_v11 = vmul.f32 %v3298_v23, %v2905_v33 }
 0x2e8   :  { %v1229_v26 = vadd.f32 %v1228_v14, %v1227_v19  ;;  %v1181_v32 = vrot.slane %v1180_v53, 2  ;;  %v3315_v33 = vstv %s3507_s0  ;;  %v2452_v24 = vmov 1983009808   ;;  %s2454_s0 = smov 4  }
 0x2e9   :  { %1565 = vadd.xlane.f32.xlu1 %v1564_v13  ;;  %v1546_v54 = vmul.f32 %v3065_v22, %v1402_v27  ;;  %v1164_v22 = vmul.f32 %v3268_v61, %v2883_v37  ;;  %v1160_v37 = vmul.f32 %v3282_v0, %v2931_v46  ;;  %v1174_v10 = vrot.slane %v1173_v49, 2 }
 0x2ea   :  { %v1230_v51 = vrot.slane %v1229_v26, 2  ;;  %v1182_v46 = vadd.f32 %v1181_v32, %v1180_v53  ;;  %v1167_v14 = vmul.f32 %v3298_v23, %v2911_v41 }
 0x2eb   :  { %1571 = vadd.xlane.f32.xlu0 %v1570_v20  ;;  %v1576_v15 = vsel %vm1032_vm10, %v1546_v54, 0.0  ;;  %v1234_v48 = vsel %vm89_vm0, %v1164_v22, 0.0  ;;  %v1206_v34 = vsel %vm89_vm0, %v1160_v37, 0.0  ;;  %v1175_v52 = vadd.f32 %v1174_v10, %v1173_v49 }
 0x2ec   :  { %v1235_v42 = vrot.slane %v1234_v48, 4  ;;  %v1207_v63 = vrot.slane %v1206_v34, 4  ;;  %v1231_v1 = vadd.f32 %v1230_v51, %v1229_v26  ;;  %v1183_v25 = vrot.slane %v1182_v46, 1 }
 0x2ed   :  { %v1176_v17 = vrot.slane %v1175_v52, 1  ;;  %v1200_v20 = vrot.slane %v1199_v39, 4  ;;  %v2453_v26 = vmov 1934713408  }
 0x2ee   :  { %v1236_v7 = vadd.f32 %v1235_v42, %v1234_v48  ;;  %v1208_v31 = vadd.f32 %v1207_v63, %v1206_v34  ;;  %v1232_v47 = vrot.slane %v1231_v1, 1  ;;  %v3302_v8 = vadd.f32 %v1183_v25, %v1182_v46 }
 0x2ef   :  { %1574 = vadd.xlane.f32.xlu0 %v1573_v58  ;;  %v1262_v58 = vsel %vm89_vm0, %v1168_v11, 0.0  ;;  %v1857_v48 = vunpack.c.l.s4 %v2452_v24  ;;  %v3323_v19 = vadd.f32 %v1200_v20, %v1199_v39  ;;  %v1874_v32 = vunpack.c.l.s4 %v2453_v26  ;;  %v3535_v20 = vld [vmem:[#allocation16_spill] sm:$0xff] }
 0x2f0   :  { %v1237_v38 = vrot.slane %v1236_v7, 2  ;;  %v1209_v6 = vrot.slane %v1208_v31, 2  ;;  %v3321_v29 = vadd.f32 %v1232_v47, %v1231_v1  ;;  %v1263_v2 = vrot.slane %v1262_v58, 4 }
 0x2f1   :  { %v1858_v10 = vunpack.c.0.s8 %v1857_v48  ;;  %v1202_v24 = vrot.slane %v3323_v19, 2 }
 0x2f2   :  { %v1238_v35 = vadd.f32 %v1237_v38, %v1236_v7  ;;  %v3304_v27 = vadd.f32 %v1209_v6, %v1208_v31  ;;  %v1875_v6 = vunpack.c.0.s8 %v1874_v32  ;;  %v1264_v48 = vadd.f32 %v1263_v2, %v1262_v58 }
 0x2f3   :  { %1577 = vadd.xlane.f32.xlu0 %v1576_v15  ;;  %v3307_v15 = vadd.f32 %v1176_v17, %v1175_v52  ;;  %v1169_v32 = vmul.f32 %v3298_v23, %v2919_v43 }
 0x2f4   :  { %v1239_v30 = vrot.slane %v1238_v35, 1  ;;  %v1211_v37 = vrot.slane %v3304_v27, 1  ;;  %v3390_v58 = vsub.s32 %v1875_v6, %v3535_v20 }
 0x2f6   :  { %v3309_v62 = vadd.f32 %v1239_v30, %v1238_v35  ;;  %v3400_v43 = vadd.f32 %v1211_v37, %v3304_v27  ;;  %v1265_v27 = vrot.slane %v1264_v48, 2 }
 0x33d   :  { %v3262_v59 = vpop.xlane.xlu0 %1583  ;;  %v3264_v36 = vpop.xlane.xlu1 %1580 }
 0x33e   :  { %v1962_v22 = vrot.slane %v3262_v59, %v2763_v18  ;;  %v1958_v50 = vrot.slane %v3264_v36, %v2763_v18  ;;  %v1165_v59 = vmul.f32 %v3268_v61, %v2921_v44 }
 0x341   :  { %v3275_v45 = vpop.xlane.xlu0 %1592 }
 0x342   :  { %v3279_v3 = vpop.xlane.xlu1 %1748  ;;  %v1974_v38 = vrot.slane %v3275_v45, %v2763_v18 }
 0x343   :  { %v2075_v42 = vrot.slane %v3279_v3, %v2763_v18  ;;  %v1993_v3 = vsel %vm720_vm4, %v1962_v22, %v1958_v50 }
 0x348   :  { %v3286_v55 = vpop.xlane.xlu0 %1595  ;;  %v3288_v40 = vpop.xlane.xlu1 %1760 }
 0x349   :  { %v1978_v63 = vrot.slane %v3286_v55, %v2763_v18  ;;  %v2091_v31 = vrot.slane %v3288_v40, %v2763_v18 }
 0x34b   :  { %v1996_v1 = vsel %vm720_vm4, %v1978_v63, %v1974_v38  ;;  %v3538_v63 = vld [vmem:[#allocation19_spill] sm:$0xff] }
 0x34c   :  { %v3291_v16 = vpop.xlane.xlu1 %1586 }
 0x34d   :  { %v1966_v41 = vrot.slane %v3291_v16, %v2763_v18 }
 0x34e   :  { %v1752_v56 = vpop.xlane.xlu0 %1751 }
 0x34f   :  { %v2079_v21 = vrot.slane %v1752_v56, %v2763_v18  ;;  %v1994_v40 = vsel %vm722_vm13, %v1966_v41, %v1993_v3  ;;  %v1161_v41 = vmul.f32 %v3282_v0, %v3538_v63 }
 0x350   :  { %v1755_v12 = vpop.xlane.xlu1 %1754 }
 0x351   :  { %v2083_v36 = vrot.slane %v1755_v12, %v2763_v18  ;;  %v2136_v49 = vsel %vm720_vm4, %v2079_v21, %v2075_v42  ;;  %v3536_v21 = vld [vmem:[#allocation21_spill] sm:$0xff]  ;;  %v1241_v42 = vsel %vm89_vm0, %v1165_v59, 0.0 }
 0x352   :  { %v1158_v22 = vmul.f32 %v3258_v28, %v3536_v21 }
 0x353   :  { %v3295_v60 = vpop.xlane.xlu0 %1763  ;;  %v2137_v9 = vsel %vm722_vm13, %v2083_v36, %v2136_v49  ;;  %v1255_v49 = vsel %vm89_vm0, %v1167_v14, 0.0  ;;  %v1242_v14 = vrot.slane %v1241_v42, 4 }
 0x354   :  { %v1590_v4 = vpop.xlane.xlu1 %1589  ;;  %v2095_v56 = vrot.slane %v3295_v60, %v2763_v18  ;;  %v1157_v60 = vmul.f32 %v3258_v28, %v2978_v5 }
 0x355   :  { %v1970_v51 = vrot.slane %v1590_v4, %v2763_v18  ;;  %v1243_v37 = vadd.f32 %v1242_v14, %v1241_v42  ;;  %v3541_v42 = vld [vmem:[#allocation17_spill] sm:$0xff] }
 0x356   :  { %v2139_v39 = vsel %vm720_vm4, %v2095_v56, %v2091_v31 }
 0x357   :  { %v3360_v11 = vsel %vm724_vm12, %v1970_v51, %v1994_v40 }
 0x358   :  { %v1599_v13 = vpop.xlane.xlu0 %1598 }
 0x359   :  { %v1982_v55 = vrot.slane %v1599_v13, %v2763_v18 }
 0x35a   :  { %v1758_v54 = vpop.xlane.xlu1 %1757 }
 0x35b   :  { %v2087_v7 = vrot.slane %v1758_v54, %v2763_v18  ;;  %v1997_v30 = vsel %vm722_vm13, %v1982_v55, %v1996_v1  ;;  %v3369_v54 = vsub.s32 %v1858_v10, %v3535_v20  ;;  %v1269_v55 = vsel %vm89_vm0, %v1169_v32, 0.0 }
 0x35c   :  { %v1767_v57 = vpop.xlane.xlu0 %1766  ;;  %v3417_v20 = vadd.f32 %v1202_v24, %v3323_v19 }
 0x35d   :  { %v2099_v16 = vrot.slane %v1767_v57, %v2763_v18  ;;  %v2138_v52 = vsel %vm724_vm12, %v2087_v7, %v2137_v9  ;;  %v1185_v7 = vsel %vm89_vm0, %v1157_v60, 0.0 }
 0x35e   :  { %v1035_v53 = vpop.xlane.xlu1 %1034  ;;  %v2152_v13 = vcombine.low %v2138_v52, %v3360_v11  ;;  %v1186_v10 = vrot.slane %v1185_v7, 4 }
 0x35f   :  { %v1047_v34 = vadd.f32 %v3315_v33, %v1035_v53  ;;  %v2140_v5 = vsel %vm722_vm13, %v2099_v16, %v2139_v39 }
 0x360   :  { %v1602_v44 = vpop.xlane.xlu0 %1601  ;;  %v2159_v2 = vrot.slane %v2152_v13, %v3369_v54  ;;  %v1187_v1 = vadd.f32 %v1186_v10, %v1185_v7 }
 0x361   :  { %v2254_v46 = vmul.f32 -1.442695, %v1047_v34  ;;  %v1986_v45 = vrot.slane %v1602_v44, %v2763_v18  ;;  %v3537_v34 = vld [vmem:[#allocation18_spill] sm:$0xff] }
 0x362   :  { %v1041_v12 = vpop.xlane.xlu1 %1040  ;;  %v1166_v28 = vmul.f32 %v3268_v61, %v3537_v34  ;;  %v1192_v61 = vsel %vm89_vm0, %v1158_v22, 0.0  ;;  %v1188_v34 = vrot.slane %v1187_v1, 2 }
 0x363   :  { %2317 = vpow2.f32 %v2254_v46  ;;  %v1049_v35 = vadd.f32 %v3315_v33, %v1041_v12  ;;  %v3374_v50 = vsel %vm724_vm12, %v1986_v45, %v1997_v30  ;;  %v1256_v46 = vrot.slane %v1255_v49, 4 }
 0x364   :  { %v1770_v25 = vpop.xlane.xlu0 %1769  ;;  %v1248_v31 = vsel %vm89_vm0, %v1166_v28, 0.0  ;;  %v1193_v16 = vrot.slane %v1192_v61, 4  ;;  %v1213_v45 = vsel %vm89_vm0, %v1161_v41, 0.0  ;;  %v1270_v30 = vrot.slane %v1269_v55, 4 }
 0x365   :  { %v2256_v4 = vmul.f32 -1.442695, %v1049_v35  ;;  %v2103_v17 = vrot.slane %v1770_v25, %v2763_v18  ;;  %v1249_v40 = vrot.slane %v1248_v31, 4  ;;  %v3539_v25 = vld [vmem:[#allocation20_spill] sm:$0xff]  ;;  %v1257_v21 = vadd.f32 %v1256_v46, %v1255_v49 }
 0x366   :  { %v3366_v47 = vpop.xlane.xlu1 %1556  ;;  %v1162_v6 = vmul.f32 %v3282_v0, %v3539_v25  ;;  %v1214_v22 = vrot.slane %v1213_v45, 4  ;;  %v1244_v0 = vrot.slane %v1243_v37, 2  ;;  %v1271_v32 = vadd.f32 %v1270_v30, %v1269_v55 }
 0x367   :  { %2319 = vpow2.f32 %v2256_v4  ;;  %v2141_v57 = vsel %vm724_vm12, %v2103_v17, %v2140_v5  ;;  %v3540_v4 = vmov 0.0   ;;  %v1250_v28 = vadd.f32 %v1249_v40, %v1248_v31 }
 0x368   :  { %v2160_v36 = vcombine.low %v2141_v57, %v3374_v50  ;;  %v1038_v53 = vpop.xlane.xlu0 %1037  ;;  %v1194_v57 = vadd.f32 %v1193_v16, %v1192_v61  ;;  %v1220_v19 = vsel %vm89_vm0, %v1162_v6, 0.0  ;;  %v1215_v14 = vadd.f32 %v1214_v22, %v1213_v45 }
 0x369   :  { %v1048_v26 = vadd.f32 %v3315_v33, %v1038_v53  ;;  %v1926_v53 = vrot.slane %v3366_v47, %v2763_v18  ;;  %v1258_v61 = vrot.slane %v1257_v21, 2  ;;  %v1221_v10 = vrot.slane %v1220_v19, 4 }
 0x36a   :  { %v3387_v3 = vpop.xlane.xlu1 %1568  ;;  %v2167_v59 = vrot.slane %v2160_v36, %v3369_v54  ;;  %v1170_v36 = vmul.f32 %v3298_v23, %v3541_v42  ;;  %v1204_v23 = vrot.slane %v3417_v20, 1  ;;  %v1195_v63 = vrot.slane %v1194_v57, 2 }
 0x36b   :  { %v2255_v44 = vmul.f32 -1.442695, %v1048_v26  ;;  %v3426_v26 = vadd.f32 %v1265_v27, %v1264_v48  ;;  %v1245_v48 = vadd.f32 %v1244_v0, %v1243_v37  ;;  %v1216_v27 = vrot.slane %v1215_v14, 2 }
 0x36c   :  { %v1044_v38 = vpop.xlane.xlu0 %1043  ;;  %v2168_v56 = vcombine.low %v2159_v2, %v2167_v59  ;;  %v2169_v51 = vcombine.high %v2159_v2, %v2167_v59  ;;  %v1222_v40 = vadd.f32 %v1221_v10, %v1220_v19  ;;  %v3441_v6 = vadd.f32 %v1258_v61, %v1257_v21 }
 0x36d   :  { %2321 = vpow2.f32 %v2255_v44  ;;  %v1050_v9 = vadd.f32 %v3315_v33, %v1044_v38  ;;  %v1276_v44 = vsel %vm89_vm0, %v1170_v36, 0.0  ;;  %v1189_v38 = vadd.f32 %v1188_v34, %v1187_v1 }
 0x36e   :  { %v2183_v12 = vrot.slane %v2169_v51, %v3390_v58  ;;  %v3407_v52 = vrot.slane %v2168_v56, %v3390_v58  ;;  %v1563_v33 = vpop.xlane.xlu1 %1562  ;;  %v1251_v56 = vrot.slane %v1250_v28, 2  ;;  %v1267_v31 = vrot.slane %v3426_v26, 1 }
 0x36f   :  { %v2257_v35 = vmul.f32 -1.442695, %v1050_v9  ;;  %v1934_v47 = vrot.slane %v1563_v33, %v2763_v18  ;;  %v1272_v9 = vrot.slane %v1271_v32, 2  ;;  %v1277_v45 = vrot.slane %v1276_v44, 4 }
 0x370   :  { %v2318_v60 = vpop.eup %2317  ;;  %v1560_v39 = vpop.xlane.xlu0 %1559  ;;  %2191 = vrot.lane.b32.xlu0 %v2183_v12, %s2448_s27  ;;  %v2184_v17 = vcombine.high %v3407_v52, %v3540_v4  ;;  %v2185_v24 = vcombine.high %v2183_v12, %v3540_v4  ;;  %v1942_v1 = vrot.slane %v3387_v3, %v2763_v18  ;;  %v1246_v33 = vrot.slane %v1245_v48, 1 }
 0x371   :  { %v1063_v13 = vadd.f32 1.0, %v2318_v60  ;;  %2323 = vpow2.f32 %v2257_v35  ;;  %v1930_v5 = vrot.slane %v1560_v39, %v2763_v18  ;;  %v1196_v35 = vadd.f32 %v1195_v63, %v1194_v57 }
 0x372   :  { %2187 = vrot.lane.b32.xlu1 %v2184_v17, %s2454_s0  ;;  %v1566_v41 = vpop.xlane.xlu1 %1565  ;;  %v1190_v39 = vrot.slane %v1189_v38, 1  ;;  %v1252_v17 = vadd.f32 %v1251_v56, %v1250_v28  ;;  %v1217_v0 = vadd.f32 %v1216_v27, %v1215_v14  ;;  %v1278_v21 = vadd.f32 %v1277_v45, %v1276_v44 }
 0x373   :  { %2325 = vrcp.f32 %v1063_v13  ;;  %v1987_v59 = vsel %vm720_vm4, %v1930_v5, %v1926_v53  ;;  %v1938_v55 = vrot.slane %v1566_v41, %v2763_v18  ;;  %v3443_v13 = vadd.f32 %v1272_v9, %v1271_v32 }
 0x374   :  { %v2320_v7 = vpop.eup %2319  ;;  %v1572_v49 = vpop.xlane.xlu0 %1571  ;;  %v1988_v51 = vsel %vm722_vm13, %v1934_v47, %v1987_v59  ;;  %v1197_v42 = vrot.slane %v1196_v35, 1  ;;  %v1223_v53 = vrot.slane %v1222_v40, 2  ;;  %v1247_v19 = vadd.f32 %v1246_v33, %v1245_v48 }
 0x375   :  { %v1065_v2 = vadd.f32 1.0, %v2320_v7  ;;  %v1946_v16 = vrot.slane %v1572_v49, %v2763_v18  ;;  %v1989_v25 = vsel %vm724_vm12, %v1938_v55, %v1988_v51  ;;  %v1253_v49 = vrot.slane %v1252_v17, 1 }
 0x376   :  { %2195 = vrot.lane.b32.xlu1 %v2185_v24, %s2455_s14  ;;  %v2003_v3 = vcombine.low %v1989_v25, %v3360_v11  ;;  %v1191_v24 = vadd.f32 %v1190_v39, %v1189_v38  ;;  %v1218_v14 = vrot.slane %v1217_v0, 1  ;;  %v1198_v63 = vadd.f32 %v1197_v42, %v1196_v35 }
 0x377   :  { %2327 = vrcp.f32 %v1065_v2  ;;  %v1990_v5 = vsel %vm720_vm4, %v1946_v16, %v1942_v1  ;;  %v1279_v41 = vrot.slane %v1278_v21, 2  ;;  %v1224_v61 = vadd.f32 %v1223_v53, %v1222_v40 }
 0x378   :  { %v1575_v46 = vpop.xlane.xlu0 %1574  ;;  %v2010_v11 = vrot.slane %v2003_v3, %v3369_v54  ;;  %v1254_v38 = vadd.f32 %v1253_v49, %v1252_v17  ;;  %v1274_v39 = vrot.slane %v3443_v13, 1 }
 0x379   :  { %v1950_v60 = vrot.slane %v1575_v46, %v2763_v18 }
 0x37a   :  { %v2322_v12 = vpop.eup %2321 }
 0x37b   :  { %v1064_v37 = vadd.f32 1.0, %v2322_v12  ;;  %v1991_v36 = vsel %vm722_vm13, %v1950_v60, %v1990_v5  ;;  %v1280_v60 = vadd.f32 %v1279_v41, %v1278_v21 }
 0x37c   :  { %v1578_v30 = vpop.xlane.xlu0 %1577 }
 0x37d   :  { %2329 = vrcp.f32 %v1064_v37  ;;  %v1954_v22 = vrot.slane %v1578_v30, %v2763_v18 }
 0x37e   :  { %v2324_v57 = vpop.eup %2323 }
 0x37f   :  { %v1066_v7 = vadd.f32 1.0, %v2324_v57  ;;  %v1992_v34 = vsel %vm724_vm12, %v1954_v22, %v1991_v36  ;;  %v1219_v57 = vadd.f32 %v1218_v14, %v1217_v0  ;;  %v1281_v36 = vrot.slane %v1280_v60, 1 }
 0x380   :  { %v2326_v28 = vpop.eup %2325  ;;  %v2011_v32 = vcombine.low %v1992_v34, %v3374_v50  ;;  %v1205_v34 = vadd.f32 %v1204_v23, %v3417_v20  ;;  %v1275_v20 = vadd.f32 %v1274_v39, %v3443_v13 }
 0x381   :  { %2331 = vrcp.f32 %v1066_v7  ;;  %v1287_v18 = vrot.slane %v2326_v28, 1  ;;  %v1288_v2 = vrot.slane %v2326_v28, 2  ;;  %v1289_v59 = vrot.slane %v2326_v28, 3 }
 0x382   :  { %v2018_v47 = vrot.slane %v2011_v32, %v3369_v54  ;;  %v1315_v16 = vmul.f32 %v2326_v28, %v3307_v15  ;;  %v1282_v14 = vadd.f32 %v1281_v36, %v1280_v60 }
 0x383   :  { %v1316_v44 = vmul.f32 %v1287_v18, %v3302_v8  ;;  %v1317_v10 = vmul.f32 %v1288_v2, %v1191_v24  ;;  %v1318_v50 = vmul.f32 %v1289_v59, %v1198_v63  ;;  %v1225_v8 = vrot.slane %v1224_v61, 1 }
 0x384   :  { %v2328_v48 = vpop.eup %2327  ;;  %v2020_v56 = vcombine.high %v2010_v11, %v2018_v47  ;;  %v2019_v51 = vcombine.low %v2010_v11, %v2018_v47  ;;  %v1260_v24 = vrot.slane %v3441_v6, 1  ;;  %v1268_v2 = vadd.f32 %v1267_v31, %v3426_v26 }
 0x385   :  { %v1293_v46 = vrot.slane %v2328_v48, 1  ;;  %v1294_v9 = vrot.slane %v2328_v48, 2  ;;  %v1295_v55 = vrot.slane %v2328_v48, 3  ;;  %v1827_v45 = vrot.slane %v1316_v44, 7 }
 0x386   :  { %v2034_v12 = vrot.slane %v2020_v56, %v3390_v58  ;;  %v3457_v27 = vrot.slane %v2019_v51, %v3390_v58  ;;  %v1829_v35 = vrot.slane %v1317_v10, 6  ;;  %v1831_v33 = vrot.slane %v1318_v50, 5 }
 0x387   :  { %v1324_v40 = vmul.f32 %v1293_v46, %v3309_v62  ;;  %v1325_v37 = vmul.f32 %v1294_v9, %v1247_v19  ;;  %v1326_v25 = vmul.f32 %v1295_v55, %v1254_v38  ;;  %v1828_v15 = vsel %vm720_vm4, %v1827_v45, %v1315_v16 }
 0x388   :  { %2042 = vrot.lane.b32.xlu0 %v2034_v12, %s2448_s27  ;;  %v2035_v1 = vcombine.high %v3457_v27, %v3540_v4  ;;  %v1830_v17 = vsel %vm722_vm13, %v1829_v35, %v1828_v15  ;;  %v2036_v62 = vcombine.high %v2034_v12, %v3540_v4  ;;  %v1323_v42 = vmul.f32 %v2328_v48, %v3321_v29 }
 0x389   :  { %v1839_v30 = vrot.slane %v1324_v40, 7  ;;  %v1841_v5 = vrot.slane %v1325_v37, 6  ;;  %v1832_v3 = vsel %vm724_vm12, %v1831_v33, %v1830_v17  ;;  %v1226_v28 = vadd.f32 %v1225_v8, %v1224_v61 }
 0x38a   :  { %v2330_v22 = vpop.eup %2329  ;;  %2038 = vrot.lane.b32.xlu1 %v2035_v1, %s2454_s0  ;;  %v1843_v19 = vrot.slane %v1326_v25, 5  ;;  %v1261_v10 = vadd.f32 %v1260_v24, %v3441_v6 }
 0x38b   :  { %v1290_v21 = vrot.slane %v2330_v22, 1  ;;  %v1291_v53 = vrot.slane %v2330_v22, 2  ;;  %v1292_v7 = vrot.slane %v2330_v22, 3  ;;  %v1840_v0 = vsel %vm720_vm4, %v1839_v30, %v1323_v42 }
 0x38c   :  { %2046 = vrot.lane.b32.xlu0 %v2036_v62, %s2455_s14  ;;  %v1842_v32 = vsel %vm722_vm13, %v1841_v5, %v1840_v0  ;;  %v1319_v41 = vmul.f32 %v2330_v22, %v1205_v34 }
 0x38d   :  { %v1320_v29 = vmul.f32 %v1290_v21, %v3400_v43  ;;  %v1321_v49 = vmul.f32 %v1291_v53, %v1219_v57  ;;  %v1322_v23 = vmul.f32 %v1292_v7, %v1226_v28  ;;  %v1844_v59 = vsel %vm724_vm12, %v1843_v19, %v1842_v32 }
 0x38e   :  { %v2332_v18 = vpop.eup %2331  ;;  %v1855_v44 = vcombine.low %v1832_v3, %v1844_v59 }
 0x38f   :  { %v1296_v63 = vrot.slane %v2332_v18, 1  ;;  %v1297_v11 = vrot.slane %v2332_v18, 2  ;;  %v1298_v47 = vrot.slane %v2332_v18, 3  ;;  %v1833_v61 = vrot.slane %v1320_v29, 7 }
 0x390   :  { %v1835_v43 = vrot.slane %v1321_v49, 6  ;;  %v1837_v31 = vrot.slane %v1322_v23, 5  ;;  %v1327_v13 = vmul.f32 %v2332_v18, %v1261_v10  ;;  %v1862_v35 = vrot.slane %v1855_v44, %v3369_v54 }
 0x391   :  { %v1328_v48 = vmul.f32 %v1296_v63, %v1268_v2  ;;  %v1329_v38 = vmul.f32 %v1297_v11, %v1275_v20  ;;  %v1330_v56 = vmul.f32 %v1298_v47, %v1282_v14  ;;  %v1834_v26 = vsel %vm720_vm4, %v1833_v61, %v1319_v41 }
 0x392   :  { %v1836_v51 = vsel %vm722_vm13, %v1835_v43, %v1834_v26 }
 0x393   :  { %v1845_v50 = vrot.slane %v1328_v48, 7  ;;  %v1847_v46 = vrot.slane %v1329_v38, 6  ;;  %v1838_v9 = vsel %vm724_vm12, %v1837_v31, %v1836_v51  ;;  %v1849_v16 = vrot.slane %v1330_v56, 5 }
 0x395   :  { %v1846_v55 = vsel %vm720_vm4, %v1845_v50, %v1327_v13  ;;  %vm2049_vm4 = vcmask 31744  }
 0x396   :  { %v1848_v12 = vsel %vm722_vm13, %v1847_v46, %v1846_v55  ;;  %vm2052_vm13 = vcmask 97280  }
 0x397   :  { %v1850_v6 = vsel %vm724_vm12, %v1849_v16, %v1848_v12  ;;  %vm2054_vm12 = vcmask 125952  }
 0x398   :  { %v1863_v45 = vcombine.low %v1838_v9, %v1850_v6 }
 0x39a   :  { %v1870_v60 = vrot.slane %v1863_v45, %v3369_v54 }
 0x39c   :  { %v1872_v8 = vcombine.high %v1862_v35, %v1870_v60  ;;  %v1871_v40 = vcombine.low %v1862_v35, %v1870_v60 }
 0x39e   :  { %v1886_v37 = vrot.slane %v1872_v8, %v3390_v58  ;;  %v1879_v1 = vrot.slane %v1871_v40, %v3390_v58 }
 0x3a0   :  { %1894 = vrot.lane.b32.xlu1 %v1886_v37, %s2456_s15  ;;  %v1887_v25 = vcombine.high %v1879_v1, %v3540_v4  ;;  %v1888_v15 = vcombine.high %v1886_v37, %v3540_v4 }
 0x3a4   :  { %1890 = vrot.lane.b32.xlu1 %v1887_v25, %s2457_s16 }
 0x3a8   :  { %1898 = vrot.lane.b32.xlu1 %v1888_v15, %s2458_s17 }
 0x3e2   :  { %v2192_v39 = vpop.permute.xlu0 %2191 }
 0x3e4   :  { %v2188_v33 = vpop.permute.xlu1 %2187 }
 0x3e5   :  { %v2198_v54 = vsel %vm2049_vm4, %v3407_v52, %v2188_v33 }
 0x3e6   :  { %v2199_v17 = vsel %vm755_vm5, %v2198_v54, %v2192_v39 }
 0x3e8   :  { %v2196_v30 = vpop.permute.xlu1 %2195 }
 0x3e9   :  { %v2200_v58 = vsel %vm2052_vm13, %v2199_v17, %v2196_v30 }
 0x3ea   :  { %2202 = vrot.lane.b32.xlu0 %v2200_v58, %s2459_s18 }
 0x3fa   :  { %v2043_v5 = vpop.permute.xlu0 %2042 }
 0x3fc   :  { %v2039_v22 = vpop.permute.xlu1 %2038 }
 0x3fd   :  { %v2050_v57 = vsel %vm2049_vm4, %v3457_v27, %v2039_v22 }
 0x3fe   :  { %v2047_v4 = vpop.permute.xlu0 %2046  ;;  %v2051_v62 = vsel %vm755_vm5, %v2050_v57, %v2043_v5 }
 0x3ff   :  { %v2053_v42 = vsel %vm2052_vm13, %v2051_v62, %v2047_v4 }
 0x400   :  { %2055 = vst.msk [vmem:[#allocation10] sm:$0xf] %vm2054_vm12, %v2053_v42 }
 0x412   :  { %v1895_v3 = vpop.permute.xlu1 %1894 }
 0x416   :  { %v1891_v52 = vpop.permute.xlu1 %1890 }
 0x417   :  { %v1901_v36 = vsel %vm89_vm0, %v1879_v1, %v1891_v52 }
 0x418   :  { %v1903_v21 = vsel %vm1902_vm3, %v1901_v36, %v1895_v3 }
 0x41a   :  { %v1899_v53 = vpop.permute.xlu1 %1898 }
 0x41b   :  { %v1905_v7 = vsel %vm1904_vm14, %v1903_v21, %v1899_v53 }
 0x41c   :  { %1906 = vst [vmem:[#allocation9] sm:$0xf] %v1905_v7 }
 0x41d   :  { %2408 = shalt.err (!%p2405_p5)
}
 0x41e   :  { %2216 = dma.vmem_to_hbm [thread:$0]  %s2214_s20, 64, %s3512_s5, [#allocation5]   ;;  %vm2205_vm0 = vcmask 257152  }
 0x41f   :  { %s2461_s24 = smov [#allocation10]  }
 0x420   :  { %s2223_s25 = sshll.u32 %s2461_s24, 4  ;;  %s2224_s25 = int_to_ptr.vmem [resolvable:$true] %s2223_s25 }
 0x421   :  { %s2417_s26 = scalar_lea.vmem %s2224_s25, 64  ;;  %p2422_p7 = scmp.lt.s32.totalorder %s2224_s25, %s2224_s25 }
 0x422   :  { %p2418_p6 = scmp.ne.s32.totalorder %s2224_s25, %s2417_s26  ;;  %p2423_p8 = scmp.lt.s32.totalorder %s2417_s26, %s2417_s26 }
 0x424   :  { %p2424_p9 = por %p2423_p8, %p2422_p7 }
 0x426   :  { %p2425_p10 = pnand %p2424_p9, %p2418_p6 }
 0x45c   :  { %v2203_v27 = vpop.permute.xlu0 %2202 }
 0x45d   :  { %2206 = vst.msk [vmem:[#allocation10] sm:$0xf] %vm2205_vm0, %v2203_v27 }
 0x45e   :  { %2428 = shalt.err (!%p2425_p10)
}
 0x45f   :  { %2226 = dma.vmem_to_hbm [thread:$0]  %s2224_s25, 64, %s3513_s6, [#allocation11]  }
 0x460   :  { %2441 = dma.done.wait [#allocation5], 64  }
 0x461   :  { %2442 = vsyncadd [#allocation5], 4294967232 }
 0x462   :  { %2443 = dma.done.wait [#allocation11], 64  }
 0x463   :  { %2444 = vsyncadd [#allocation11], 4294967232 }
 0x464   :  { %2233 = vsyncpa [#allocation4], 1 }
 0x465   :  { %2234 = vsyncpa [#allocation7], 1 }
 0x466   :  { %2235 = vsyncpa [#allocation5], 1 }
 0x467   :  { %2236 = vsyncpa [#allocation11], 1 }

</bundles_post_ra>
